<compile_context>
chip_gen: v7x
topology: tpu7x:2x2x1
jax: 0.10.0
libtpu: 0.0.40
codegen_flags: <defaults>
</compile_context>

<pallas_src>
import functools

import jax
import jax.numpy as jnp
from jax import lax
from jax.experimental import pallas as pl
from jax.experimental.pallas import tpu as pltpu


# ---------------------------------------------------------------------------
# Fused kernel: conv(1->C, 'same') -> LeakyReLU -> MaxPool1d(2,2) -> channel
# sum (mean folded into weights) -> LSTM (packed-seq semantics via masking)
# -> final Linear (128-lane-padded output).
# ---------------------------------------------------------------------------
def fused_recurrent_conv_kernel(cpar_ref, x_in_ref, wih_ref, wpk_ref, out_ref,
                                *, c_out, k_size, hidden, seq_len, lh, lp):
    B = out_ref.shape[0]
    W = x_in_ref.shape[-1]            # lane-dense conv working width (>= Lh + hp)
    H = hidden
    G = 4 * H                         # fused gate width i|f|g|o (128 for H=32)
    hp = (k_size - 1) // 2            # 'same' padding for odd kernel sizes
    KP1 = k_size + 1

    # x_in planes: [0] even lanes of x_pad, [1] odd lanes, [2] validity mask (cols < T)
    x_even = x_in_ref[0]              # (B, W)  x_even[b, j] = x_pad[b, 2j]
    x_odd = x_in_ref[1]               # (B, W)  x_odd[b, j]  = x_pad[b, 2j+1]
    mask_valid = x_in_ref[2] > 0.5    # (B, W) bool; column t == (t < lengths[b])

    # ---- conv taps via XLU rolls (R1): tap[o][b, j] = x_pad[b, 2j + o] ------
    # shift = W - m  ==  roll by -m  (kept non-negative); wrap lands in junk cols.
    even_sh = [x_even]
    odd_sh = [x_odd]
    for m in range(1, hp + 1):
        even_sh.append(pltpu.roll(x_even, shift=W - m, axis=1))
        odd_sh.append(pltpu.roll(x_odd, shift=W - m, axis=1))
    taps = [even_sh[o // 2] if o % 2 == 0 else odd_sh[o // 2]
            for o in range(k_size + 1)]

    # ---- Conv + LeakyReLU + MaxPool(2,2), summed over channels --------------
    feat = jnp.zeros((B, W), jnp.float32)
    for ch in range(c_out):
        conv_e = jnp.zeros((B, W), jnp.float32)   # conv at even positions 2j
        conv_o = jnp.zeros((B, W), jnp.float32)   # conv at odd positions 2j+1
        for k in range(k_size):
            wk = cpar_ref[ch * KP1 + k]           # scalar from SMEM
            conv_e = conv_e + taps[k] * wk
            conv_o = conv_o + taps[k + 1] * wk
        bias_c = cpar_ref[ch * KP1 + k_size]
        conv_e = conv_e + bias_c
        conv_o = conv_o + bias_c
        # LeakyReLU (negative_slope = 0.01, PyTorch default)
        act_e = jnp.where(conv_e >= 0, conv_e, 0.01 * conv_e)
        act_o = jnp.where(conv_o >= 0, conv_o, 0.01 * conv_o)
        # MaxPool1d(kernel=2, stride=2): max over the (even, odd) pair
        feat = feat + jnp.maximum(act_e, act_o)
    # channel mean 1/c_out is folded into wih_ref rows at init (R5) -> no mul here.

    # ones-column at lane Lh -> weight row Lh (tiled b_ih+b_hh) injects the gate
    # bias into every step's block of x_proj (R6).
    lane = lax.broadcasted_iota(jnp.int32, (B, W), 1)
    feat = jnp.where(lane == lh, 1.0, feat)

    # ---- hoisted LSTM input projection for ALL T steps (R2) -----------------
    # (B, Lp) bf16 @ (Lp, T*4H) bf16 -> f32; rows [Lh+1, Lp) of the weight are
    # zero, so junk feat columns in that range are masked; cols >= Lp are dropped.
    x_proj = jnp.dot(feat[:, :lp].astype(jnp.bfloat16), wih_ref[...],
                     preferred_element_type=jnp.float32)       # (B, T*G)

    # packed small weights (R3): rows [0,H) w_hh, [H,2H) w_fc(pad128), row 2H b_fc(pad128)
    whh = wpk_ref[0:H, :]             # (H, 128); cols >= 4H are zero
    h = jnp.zeros((B, H), jnp.float32)
    c = jnp.zeros((B, H), jnp.float32)

    # T is small & static -> fully unrolled recurrence; per step only one
    # (B,H)@(H,128) matmul + 2 EUP slabs sit on the serial path.
    # (pltpu.matmul_push_rhs staging of whh was considered but skipped -- optional/risky.)
    for t in range(seq_len):
        hh = jnp.dot(h, whh, preferred_element_type=jnp.float32)      # (B, 128)
        pre = x_proj[:, t * G:(t + 1) * G] + hh[:, :G]                # (B, 4H)
        sg = jax.nn.sigmoid(pre)               # one full-slab sigmoid (R4)
        i_g = sg[:, 0:H]
        f_g = sg[:, H:2 * H]
        o_g = sg[:, 3 * H:4 * H]
        g_g = jnp.tanh(pre[:, 2 * H:3 * H])
        c_new = f_g * c + i_g * g_g
        h_new = o_g * jnp.tanh(c_new)
        # pack_padded_sequence semantics: freeze h/c once t >= lengths[b],
        # so the final h equals h_n of the packed LSTM.
        valid = mask_valid[:, t:t + 1]
        h = jnp.where(valid, h_new, h)
        c = jnp.where(valid, c_new, c)

    # ---- final FC on h_n, lane-dense 128-wide store (R10) -------------------
    wfc = wpk_ref[H:2 * H, :]          # (H, 128), cols >= n_classes zero
    bfc = wpk_ref[2 * H:2 * H + 1, :]  # (1, 128)
    out_ref[...] = (jnp.dot(h, wfc, preferred_element_type=jnp.float32) + bfc)


# ---------------------------------------------------------------------------
# Wrapper: minimal plain-JAX glue (zero-pad, even/odd deinterleave, validity
# mask plane, final n_classes slice).
# ---------------------------------------------------------------------------
@functools.partial(jax.jit, static_argnames=("cnn_kernel_size",
                                             "cnn_output_channels",
                                             "rnn_hidden_dim", "n_classes"))
def recurrent_conv_forward(x, lengths, kparams, *, cnn_kernel_size,
                           cnn_output_channels, rnn_hidden_dim, n_classes):
    B, T, F = x.shape
    L = T * F
    K = cnn_kernel_size
    assert K % 2 == 1, "module only supports odd cnn_kernel_size"
    hp = (K - 1) // 2
    Lh = L // 2
    H = rnn_hidden_dim
    Lp, TG = kparams["w_ih_block"].shape
    assert TG == T * 4 * H and Lp > Lh
    W = ((Lh + hp + 127) // 128) * 128          # lane-dense conv working width
    assert W >= Lh + hp and Lp <= W

    # x.view(B, 1, -1) with a single input channel -> (B, L), then 'same' pad
    x_flat = x.reshape(B, L).astype(jnp.float32)
    x_pad = jnp.pad(x_flat, ((0, 0), (hp, hp)))                    # (B, L + K - 1)
    ev = x_pad[:, 0::2]                                            # (B, Lh + hp)
    od = x_pad[:, 1::2]                                            # (B, Lh + hp)
    msk = (jnp.arange(T)[None, :]
           < lengths.astype(jnp.int32).reshape(B, 1)).astype(jnp.float32)   # (B, T)
    pad_w = lambda a: jnp.pad(a, ((0, 0), (0, W - a.shape[1])))
    x_in = jnp.stack([pad_w(ev), pad_w(od), pad_w(msk)], axis=0)   # (3, B, W)

    kernel = functools.partial(
        fused_recurrent_conv_kernel,
        c_out=cnn_output_channels, k_size=K, hidden=H, seq_len=T, lh=Lh, lp=Lp)

    out = pl.pallas_call(
        kernel,
        out_shape=jax.ShapeDtypeStruct((B, 128), jnp.float32),
        in_specs=[
            pl.BlockSpec(memory_space=pltpu.MemorySpace.SMEM),   # conv w+b (packed)
            pl.BlockSpec(memory_space=pltpu.MemorySpace.VMEM),   # even|odd|mask planes
            pl.BlockSpec(memory_space=pltpu.MemorySpace.VMEM),   # w_ih block-diag (bf16)
            pl.BlockSpec(memory_space=pltpu.MemorySpace.VMEM),   # packed small weights
        ],
        out_specs=pl.BlockSpec(memory_space=pltpu.MemorySpace.VMEM),
    )(kparams["conv_wb"], x_in, kparams["w_ih_block"], kparams["w_small"])
    return out[:, :n_classes]


# ---------------------------------------------------------------------------
# Parameters: "torch-layout" params (used by the independent reference) and a
# one-time layout prep into the kernel's packed arrays.
# ---------------------------------------------------------------------------
def init_torch_params(key, T, F, H, C, K, n_classes):
    keys = jax.random.split(key, 8)
    F_out = F // 2
    return {
        "conv_w": 0.1 * jax.random.normal(keys[0], (C, K), jnp.float32),   # Conv1d(1,C,K)
        "conv_b": 0.1 * jax.random.normal(keys[1], (C,), jnp.float32),
        "w_ih": 0.1 * jax.random.normal(keys[2], (4 * H, F_out), jnp.float32),  # i|f|g|o
        "w_hh": 0.1 * jax.random.normal(keys[3], (4 * H, H), jnp.float32),
        "b_ih": 0.1 * jax.random.normal(keys[4], (4 * H,), jnp.float32),
        "b_hh": 0.1 * jax.random.normal(keys[5], (4 * H,), jnp.float32),
        "w_fc": 0.1 * jax.random.normal(keys[6], (n_classes, H), jnp.float32),
        "b_fc": 0.1 * jax.random.normal(keys[7], (n_classes,), jnp.float32),
    }


def prepare_kernel_params(tp, *, T, F, H, C, K, n_classes):
    assert K % 2 == 1 and 4 * H <= 128 and n_classes <= 128
    F_out = F // 2
    Lh = T * F_out

    # 1) conv weight+bias packed into one tiny 1-D SMEM array: [w_0..w_{K-1}, b] per ch.
    conv_wb = jnp.concatenate(
        [jnp.concatenate([tp["conv_w"][c], tp["conv_b"][c:c + 1]]) for c in range(C)])

    # 2) block-diagonal LSTM input projection, trimmed to its nonzero rows (R2),
    #    with channel-mean 1/C (R5) and the gate bias (R6, row Lh) folded in; bf16.
    Lp = ((Lh + 1 + 15) // 16) * 16
    wih_t = tp["w_ih"].T * (1.0 / C)                        # (F_out, 4H), gates i|f|g|o
    blk = jnp.kron(jnp.eye(T, dtype=jnp.float32), wih_t)    # (Lh, T*4H)
    bias_row = jnp.tile(tp["b_ih"] + tp["b_hh"], T)         # (T*4H,)
    wih_block = jnp.zeros((Lp, T * 4 * H), jnp.float32)
    wih_block = wih_block.at[:Lh, :].set(blk).at[Lh, :].set(bias_row)
    wih_block = wih_block.astype(jnp.bfloat16)

    # 3) remaining small weights packed into ONE lane-dense (R,128) f32 slab (R3).
    R = ((2 * H + 1 + 7) // 8) * 8
    w_small = jnp.zeros((R, 128), jnp.float32)
    w_small = w_small.at[:H, :4 * H].set(tp["w_hh"].T)           # rows [0,H): W_hh^T
    w_small = w_small.at[H:2 * H, :n_classes].set(tp["w_fc"].T)  # rows [H,2H): W_fc^T
    w_small = w_small.at[2 * H, :n_classes].set(tp["b_fc"])      # row 2H: b_fc

    return {"conv_wb": conv_wb, "w_ih_block": wih_block, "w_small": w_small}


# ---------------------------------------------------------------------------
# Pure-JAX reference built ONLY from torch-layout params (so the kron /
# bias-fold / scale-fold / bf16 layout prep is independently validated).
# ---------------------------------------------------------------------------
def reference_forward(x, lengths, tp, *, cnn_kernel_size, cnn_output_channels,
                      rnn_hidden_dim, n_classes):
    B, T, F = x.shape
    L = T * F
    K = cnn_kernel_size
    C = cnn_output_channels
    H = rnn_hidden_dim
    hp = (K - 1) // 2
    F_out = F // 2
    Lh = L // 2

    x_flat = x.reshape(B, L).astype(jnp.float32)
    x_pad = jnp.pad(x_flat, ((0, 0), (hp, hp)))
    conv = jnp.stack(
        [tp["conv_b"][c]
         + sum(tp["conv_w"][c, k] * x_pad[:, k:k + L] for k in range(K))
         for c in range(C)], axis=1)                              # (B, C, L)
    act = jnp.where(conv >= 0, conv, 0.01 * conv)
    pooled = jnp.max(act.reshape(B, C, Lh, 2), axis=-1)           # (B, C, Lh)
    feat = jnp.mean(pooled, axis=1).reshape(B, T, F_out)          # (B, T, F_out)

    wih_t = tp["w_ih"].T
    whh_t = tp["w_hh"].T
    b_g = (tp["b_ih"] + tp["b_hh"])[None, :]
    lens = lengths.astype(jnp.int32).reshape(B, 1)
    h = jnp.zeros((B, H), jnp.float32)
    c = jnp.zeros((B, H), jnp.float32)
    for t in range(T):
        pre = feat[:, t, :] @ wih_t + h @ whh_t + b_g
        i_g = jax.nn.sigmoid(pre[:, :H])
        f_g = jax.nn.sigmoid(pre[:, H:2 * H])
        g_g = jnp.tanh(pre[:, 2 * H:3 * H])
        o_g = jax.nn.sigmoid(pre[:, 3 * H:])
        c_new = f_g * c + i_g * g_g
        h_new = o_g * jnp.tanh(c_new)
        valid = t < lens
        h = jnp.where(valid, h_new, h)
        c = jnp.where(valid, c_new, c)
    return h @ tp["w_fc"].T + tp["b_fc"][None, :]


if __name__ == "__main__":
    # input_size = (num_indices, time_steps=8, feature_dim=16); batch = 2
    B, T, F = 2, 8, 16
    H, C_out, K, N_CLASSES = 32, 4, 3, 5

    key = jax.random.PRNGKey(0)
    kx, kp = jax.random.split(key)
    x = jax.random.normal(kx, (B, T, F), jnp.float32)
    # pack_padded_sequence requires lengths sorted descending
    lengths = jnp.array([8, 5], dtype=jnp.int32)

    torch_params = init_torch_params(kp, T, F, H, C_out, K, N_CLASSES)
    kparams = prepare_kernel_params(torch_params, T=T, F=F, H=H, C=C_out, K=K,
                                    n_classes=N_CLASSES)

    score = recurrent_conv_forward(
        x, lengths, kparams,
        cnn_kernel_size=K, cnn_output_channels=C_out,
        rnn_hidden_dim=H, n_classes=N_CLASSES)
    jax.block_until_ready(score)

    ref = reference_forward(
        x, lengths, torch_params,
        cnn_kernel_size=K, cnn_output_channels=C_out,
        rnn_hidden_dim=H, n_classes=N_CLASSES)
    err = float(jnp.max(jnp.abs(score - ref)))

    assert score.shape == (B, N_CLASSES)
    assert bool(jnp.all(jnp.isfinite(score)))
    # bf16 input-projection path -> slightly looser tolerance than pure f32
    assert err < 2e-2, f"kernel/reference mismatch: max abs err = {err}"
    print("KERNEL_OK")
</pallas_src>

<mosaic_0001>
module attributes {stable_mosaic.version = 11 : i64} {
  func.func @fused_recurrent_conv_kernel(%arg0: memref<16xf32, #tpu.memory_space<smem>>, %arg1: memref<3x2x128xf32, #tpu.memory_space<vmem>>, %arg2: memref<80x1024xbf16, #tpu.memory_space<vmem>>, %arg3: memref<72x128xf32, #tpu.memory_space<vmem>>, %arg4: memref<2x128xf32, #tpu.memory_space<vmem>>) attributes {dimension_semantics = [], scalar_prefetch = 0 : i64, scratch_operands = 0 : i64, tpu.core_type = #tpu.core_type<tc>} {
    %c0 = arith.constant 0 : index
    %c0_0 = arith.constant 0 : index
    %c0_1 = arith.constant 0 : index
    %0 = vector.load %arg1[%c0, %c0_0, %c0_1] : memref<3x2x128xf32, #tpu.memory_space<vmem>>, vector<1x2x128xf32>
    %1 = vector.shape_cast %0 : vector<1x2x128xf32> to vector<2x128xf32>
    %c1 = arith.constant 1 : index
    %c0_2 = arith.constant 0 : index
    %c0_3 = arith.constant 0 : index
    %2 = vector.load %arg1[%c1, %c0_2, %c0_3] : memref<3x2x128xf32, #tpu.memory_space<vmem>>, vector<1x2x128xf32>
    %3 = vector.shape_cast %2 : vector<1x2x128xf32> to vector<2x128xf32>
    %c2 = arith.constant 2 : index
    %c0_4 = arith.constant 0 : index
    %c0_5 = arith.constant 0 : index
    %4 = vector.load %arg1[%c2, %c0_4, %c0_5] : memref<3x2x128xf32, #tpu.memory_space<vmem>>, vector<1x2x128xf32>
    %5 = vector.shape_cast %4 : vector<1x2x128xf32> to vector<2x128xf32>
    %cst = arith.constant 5.000000e-01 : f32
    %6 = vector.broadcast %cst : f32 to vector<2x128xf32>
    %7 = arith.cmpf ogt, %5, %6 : vector<2x128xf32>
    %c127_i32 = arith.constant 127 : i32
    %8 = tpu.dynamic_rotate %1 by %c127_i32 dim 1 : vector<2x128xf32>, i32 -> vector<2x128xf32>
    %c127_i32_6 = arith.constant 127 : i32
    %9 = tpu.dynamic_rotate %3 by %c127_i32_6 dim 1 : vector<2x128xf32>, i32 -> vector<2x128xf32>
    %cst_7 = arith.constant 0.000000e+00 : f32
    %10 = vector.broadcast %cst_7 : f32 to vector<2x128xf32>
    %cst_8 = arith.constant 0.000000e+00 : f32
    %11 = vector.broadcast %cst_8 : f32 to vector<2x128xf32>
    %cst_9 = arith.constant 0.000000e+00 : f32
    %12 = vector.broadcast %cst_9 : f32 to vector<2x128xf32>
    %c0_10 = arith.constant 0 : index
    %13 = memref.load %arg0[%c0_10] : memref<16xf32, #tpu.memory_space<smem>>
    %14 = vector.broadcast %13 : f32 to vector<2x128xf32>
    %15 = arith.mulf %1, %14 : vector<2x128xf32>
    %16 = arith.addf %11, %15 : vector<2x128xf32>
    %17 = vector.broadcast %13 : f32 to vector<2x128xf32>
    %18 = arith.mulf %3, %17 : vector<2x128xf32>
    %19 = arith.addf %12, %18 : vector<2x128xf32>
    %c1_11 = arith.constant 1 : index
    %20 = memref.load %arg0[%c1_11] : memref<16xf32, #tpu.memory_space<smem>>
    %21 = vector.broadcast %20 : f32 to vector<2x128xf32>
    %22 = arith.mulf %3, %21 : vector<2x128xf32>
    %23 = arith.addf %16, %22 : vector<2x128xf32>
    %24 = vector.broadcast %20 : f32 to vector<2x128xf32>
    %25 = arith.mulf %8, %24 : vector<2x128xf32>
    %26 = arith.addf %19, %25 : vector<2x128xf32>
    %c2_12 = arith.constant 2 : index
    %27 = memref.load %arg0[%c2_12] : memref<16xf32, #tpu.memory_space<smem>>
    %28 = vector.broadcast %27 : f32 to vector<2x128xf32>
    %29 = arith.mulf %8, %28 : vector<2x128xf32>
    %30 = arith.addf %23, %29 : vector<2x128xf32>
    %31 = vector.broadcast %27 : f32 to vector<2x128xf32>
    %32 = arith.mulf %9, %31 : vector<2x128xf32>
    %33 = arith.addf %26, %32 : vector<2x128xf32>
    %c3 = arith.constant 3 : index
    %34 = memref.load %arg0[%c3] : memref<16xf32, #tpu.memory_space<smem>>
    %35 = vector.broadcast %34 : f32 to vector<2x128xf32>
    %36 = arith.addf %30, %35 : vector<2x128xf32>
    %37 = vector.broadcast %34 : f32 to vector<2x128xf32>
    %38 = arith.addf %33, %37 : vector<2x128xf32>
    %cst_13 = arith.constant 0.000000e+00 : f32
    %39 = vector.broadcast %cst_13 : f32 to vector<2x128xf32>
    %40 = arith.cmpf oge, %36, %39 : vector<2x128xf32>
    %cst_14 = arith.constant 0.00999999977 : f32
    %41 = vector.broadcast %cst_14 : f32 to vector<2x128xf32>
    %42 = arith.mulf %41, %36 : vector<2x128xf32>
    %43 = arith.select %40, %36, %42 : vector<2x128xi1>, vector<2x128xf32>
    %cst_15 = arith.constant 0.000000e+00 : f32
    %44 = vector.broadcast %cst_15 : f32 to vector<2x128xf32>
    %45 = arith.cmpf oge, %38, %44 : vector<2x128xf32>
    %cst_16 = arith.constant 0.00999999977 : f32
    %46 = vector.broadcast %cst_16 : f32 to vector<2x128xf32>
    %47 = arith.mulf %46, %38 : vector<2x128xf32>
    %48 = arith.select %45, %38, %47 : vector<2x128xi1>, vector<2x128xf32>
    %49 = arith.maximumf %43, %48 : vector<2x128xf32>
    %50 = arith.addf %10, %49 : vector<2x128xf32>
    %cst_17 = arith.constant 0.000000e+00 : f32
    %51 = vector.broadcast %cst_17 : f32 to vector<2x128xf32>
    %cst_18 = arith.constant 0.000000e+00 : f32
    %52 = vector.broadcast %cst_18 : f32 to vector<2x128xf32>
    %c4 = arith.constant 4 : index
    %53 = memref.load %arg0[%c4] : memref<16xf32, #tpu.memory_space<smem>>
    %54 = vector.broadcast %53 : f32 to vector<2x128xf32>
    %55 = arith.mulf %1, %54 : vector<2x128xf32>
    %56 = arith.addf %51, %55 : vector<2x128xf32>
    %57 = vector.broadcast %53 : f32 to vector<2x128xf32>
    %58 = arith.mulf %3, %57 : vector<2x128xf32>
    %59 = arith.addf %52, %58 : vector<2x128xf32>
    %c5 = arith.constant 5 : index
    %60 = memref.load %arg0[%c5] : memref<16xf32, #tpu.memory_space<smem>>
    %61 = vector.broadcast %60 : f32 to vector<2x128xf32>
    %62 = arith.mulf %3, %61 : vector<2x128xf32>
    %63 = arith.addf %56, %62 : vector<2x128xf32>
    %64 = vector.broadcast %60 : f32 to vector<2x128xf32>
    %65 = arith.mulf %8, %64 : vector<2x128xf32>
    %66 = arith.addf %59, %65 : vector<2x128xf32>
    %c6 = arith.constant 6 : index
    %67 = memref.load %arg0[%c6] : memref<16xf32, #tpu.memory_space<smem>>
    %68 = vector.broadcast %67 : f32 to vector<2x128xf32>
    %69 = arith.mulf %8, %68 : vector<2x128xf32>
    %70 = arith.addf %63, %69 : vector<2x128xf32>
    %71 = vector.broadcast %67 : f32 to vector<2x128xf32>
    %72 = arith.mulf %9, %71 : vector<2x128xf32>
    %73 = arith.addf %66, %72 : vector<2x128xf32>
    %c7 = arith.constant 7 : index
    %74 = memref.load %arg0[%c7] : memref<16xf32, #tpu.memory_space<smem>>
    %75 = vector.broadcast %74 : f32 to vector<2x128xf32>
    %76 = arith.addf %70, %75 : vector<2x128xf32>
    %77 = vector.broadcast %74 : f32 to vector<2x128xf32>
    %78 = arith.addf %73, %77 : vector<2x128xf32>
    %cst_19 = arith.constant 0.000000e+00 : f32
    %79 = vector.broadcast %cst_19 : f32 to vector<2x128xf32>
    %80 = arith.cmpf oge, %76, %79 : vector<2x128xf32>
    %cst_20 = arith.constant 0.00999999977 : f32
    %81 = vector.broadcast %cst_20 : f32 to vector<2x128xf32>
    %82 = arith.mulf %81, %76 : vector<2x128xf32>
    %83 = arith.select %80, %76, %82 : vector<2x128xi1>, vector<2x128xf32>
    %cst_21 = arith.constant 0.000000e+00 : f32
    %84 = vector.broadcast %cst_21 : f32 to vector<2x128xf32>
    %85 = arith.cmpf oge, %78, %84 : vector<2x128xf32>
    %cst_22 = arith.constant 0.00999999977 : f32
    %86 = vector.broadcast %cst_22 : f32 to vector<2x128xf32>
    %87 = arith.mulf %86, %78 : vector<2x128xf32>
    %88 = arith.select %85, %78, %87 : vector<2x128xi1>, vector<2x128xf32>
    %89 = arith.maximumf %83, %88 : vector<2x128xf32>
    %90 = arith.addf %50, %89 : vector<2x128xf32>
    %cst_23 = arith.constant 0.000000e+00 : f32
    %91 = vector.broadcast %cst_23 : f32 to vector<2x128xf32>
    %cst_24 = arith.constant 0.000000e+00 : f32
    %92 = vector.broadcast %cst_24 : f32 to vector<2x128xf32>
    %c8 = arith.constant 8 : index
    %93 = memref.load %arg0[%c8] : memref<16xf32, #tpu.memory_space<smem>>
    %94 = vector.broadcast %93 : f32 to vector<2x128xf32>
    %95 = arith.mulf %1, %94 : vector<2x128xf32>
    %96 = arith.addf %91, %95 : vector<2x128xf32>
    %97 = vector.broadcast %93 : f32 to vector<2x128xf32>
    %98 = arith.mulf %3, %97 : vector<2x128xf32>
    %99 = arith.addf %92, %98 : vector<2x128xf32>
    %c9 = arith.constant 9 : index
    %100 = memref.load %arg0[%c9] : memref<16xf32, #tpu.memory_space<smem>>
    %101 = vector.broadcast %100 : f32 to vector<2x128xf32>
    %102 = arith.mulf %3, %101 : vector<2x128xf32>
    %103 = arith.addf %96, %102 : vector<2x128xf32>
    %104 = vector.broadcast %100 : f32 to vector<2x128xf32>
    %105 = arith.mulf %8, %104 : vector<2x128xf32>
    %106 = arith.addf %99, %105 : vector<2x128xf32>
    %c10 = arith.constant 10 : index
    %107 = memref.load %arg0[%c10] : memref<16xf32, #tpu.memory_space<smem>>
    %108 = vector.broadcast %107 : f32 to vector<2x128xf32>
    %109 = arith.mulf %8, %108 : vector<2x128xf32>
    %110 = arith.addf %103, %109 : vector<2x128xf32>
    %111 = vector.broadcast %107 : f32 to vector<2x128xf32>
    %112 = arith.mulf %9, %111 : vector<2x128xf32>
    %113 = arith.addf %106, %112 : vector<2x128xf32>
    %c11 = arith.constant 11 : index
    %114 = memref.load %arg0[%c11] : memref<16xf32, #tpu.memory_space<smem>>
    %115 = vector.broadcast %114 : f32 to vector<2x128xf32>
    %116 = arith.addf %110, %115 : vector<2x128xf32>
    %117 = vector.broadcast %114 : f32 to vector<2x128xf32>
    %118 = arith.addf %113, %117 : vector<2x128xf32>
    %cst_25 = arith.constant 0.000000e+00 : f32
    %119 = vector.broadcast %cst_25 : f32 to vector<2x128xf32>
    %120 = arith.cmpf oge, %116, %119 : vector<2x128xf32>
    %cst_26 = arith.constant 0.00999999977 : f32
    %121 = vector.broadcast %cst_26 : f32 to vector<2x128xf32>
    %122 = arith.mulf %121, %116 : vector<2x128xf32>
    %123 = arith.select %120, %116, %122 : vector<2x128xi1>, vector<2x128xf32>
    %cst_27 = arith.constant 0.000000e+00 : f32
    %124 = vector.broadcast %cst_27 : f32 to vector<2x128xf32>
    %125 = arith.cmpf oge, %118, %124 : vector<2x128xf32>
    %cst_28 = arith.constant 0.00999999977 : f32
    %126 = vector.broadcast %cst_28 : f32 to vector<2x128xf32>
    %127 = arith.mulf %126, %118 : vector<2x128xf32>
    %128 = arith.select %125, %118, %127 : vector<2x128xi1>, vector<2x128xf32>
    %129 = arith.maximumf %123, %128 : vector<2x128xf32>
    %130 = arith.addf %90, %129 : vector<2x128xf32>
    %cst_29 = arith.constant 0.000000e+00 : f32
    %131 = vector.broadcast %cst_29 : f32 to vector<2x128xf32>
    %cst_30 = arith.constant 0.000000e+00 : f32
    %132 = vector.broadcast %cst_30 : f32 to vector<2x128xf32>
    %c12 = arith.constant 12 : index
    %133 = memref.load %arg0[%c12] : memref<16xf32, #tpu.memory_space<smem>>
    %134 = vector.broadcast %133 : f32 to vector<2x128xf32>
    %135 = arith.mulf %1, %134 : vector<2x128xf32>
    %136 = arith.addf %131, %135 : vector<2x128xf32>
    %137 = vector.broadcast %133 : f32 to vector<2x128xf32>
    %138 = arith.mulf %3, %137 : vector<2x128xf32>
    %139 = arith.addf %132, %138 : vector<2x128xf32>
    %c13 = arith.constant 13 : index
    %140 = memref.load %arg0[%c13] : memref<16xf32, #tpu.memory_space<smem>>
    %141 = vector.broadcast %140 : f32 to vector<2x128xf32>
    %142 = arith.mulf %3, %141 : vector<2x128xf32>
    %143 = arith.addf %136, %142 : vector<2x128xf32>
    %144 = vector.broadcast %140 : f32 to vector<2x128xf32>
    %145 = arith.mulf %8, %144 : vector<2x128xf32>
    %146 = arith.addf %139, %145 : vector<2x128xf32>
    %c14 = arith.constant 14 : index
    %147 = memref.load %arg0[%c14] : memref<16xf32, #tpu.memory_space<smem>>
    %148 = vector.broadcast %147 : f32 to vector<2x128xf32>
    %149 = arith.mulf %8, %148 : vector<2x128xf32>
    %150 = arith.addf %143, %149 : vector<2x128xf32>
    %151 = vector.broadcast %147 : f32 to vector<2x128xf32>
    %152 = arith.mulf %9, %151 : vector<2x128xf32>
    %153 = arith.addf %146, %152 : vector<2x128xf32>
    %c15 = arith.constant 15 : index
    %154 = memref.load %arg0[%c15] : memref<16xf32, #tpu.memory_space<smem>>
    %155 = vector.broadcast %154 : f32 to vector<2x128xf32>
    %156 = arith.addf %150, %155 : vector<2x128xf32>
    %157 = vector.broadcast %154 : f32 to vector<2x128xf32>
    %158 = arith.addf %153, %157 : vector<2x128xf32>
    %cst_31 = arith.constant 0.000000e+00 : f32
    %159 = vector.broadcast %cst_31 : f32 to vector<2x128xf32>
    %160 = arith.cmpf oge, %156, %159 : vector<2x128xf32>
    %cst_32 = arith.constant 0.00999999977 : f32
    %161 = vector.broadcast %cst_32 : f32 to vector<2x128xf32>
    %162 = arith.mulf %161, %156 : vector<2x128xf32>
    %163 = arith.select %160, %156, %162 : vector<2x128xi1>, vector<2x128xf32>
    %cst_33 = arith.constant 0.000000e+00 : f32
    %164 = vector.broadcast %cst_33 : f32 to vector<2x128xf32>
    %165 = arith.cmpf oge, %158, %164 : vector<2x128xf32>
    %cst_34 = arith.constant 0.00999999977 : f32
    %166 = vector.broadcast %cst_34 : f32 to vector<2x128xf32>
    %167 = arith.mulf %166, %158 : vector<2x128xf32>
    %168 = arith.select %165, %158, %167 : vector<2x128xi1>, vector<2x128xf32>
    %169 = arith.maximumf %163, %168 : vector<2x128xf32>
    %170 = arith.addf %130, %169 : vector<2x128xf32>
    %171 = tpu.iota {dimensions = array<i32: 1>} : vector<2x128xi32>
    %c64_i32 = arith.constant 64 : i32
    %172 = vector.broadcast %c64_i32 : i32 to vector<2x128xi32>
    %173 = arith.cmpi eq, %171, %172 : vector<2x128xi32>
    %cst_35 = arith.constant 1.000000e+00 : f32
    %174 = vector.broadcast %cst_35 : f32 to vector<2x128xf32>
    %175 = arith.select %173, %174, %170 : vector<2x128xi1>, vector<2x128xf32>
    %176 = vector.extract_strided_slice %175 {offsets = [0, 0], sizes = [2, 80], strides = [1, 1]} : vector<2x128xf32> to vector<2x80xf32>
    %177 = arith.truncf %176 : vector<2x80xf32> to vector<2x80xbf16>
    %c0_36 = arith.constant 0 : index
    %c0_37 = arith.constant 0 : index
    %178 = vector.load %arg2[%c0_36, %c0_37] : memref<80x1024xbf16, #tpu.memory_space<vmem>>, vector<80x1024xbf16>
    %cst_38 = arith.constant dense<0.000000e+00> : vector<2x1024xf32>
    %179 = tpu.matmul %177, %178, %cst_38 {dimension_numbers = #tpu.dot_dimension_numbers<[1], [0], [0], [1], [0, 0, 1, 1], [], []>} : vector<2x80xbf16>, vector<80x1024xbf16>, vector<2x1024xf32> -> vector<2x1024xf32>
    %c0_39 = arith.constant 0 : index
    %c0_40 = arith.constant 0 : index
    %180 = vector.load %arg3[%c0_39, %c0_40] : memref<72x128xf32, #tpu.memory_space<vmem>>, vector<32x128xf32>
    %cst_41 = arith.constant 0.000000e+00 : f32
    %181 = vector.broadcast %cst_41 : f32 to vector<2x32xf32>
    %cst_42 = arith.constant 0.000000e+00 : f32
    %182 = vector.broadcast %cst_42 : f32 to vector<2x32xf32>
    %cst_43 = arith.constant dense<0.000000e+00> : vector<2x128xf32>
    %183 = tpu.matmul %181, %180, %cst_43 {dimension_numbers = #tpu.dot_dimension_numbers<[1], [0], [0], [1], [0, 0, 1, 1], [], []>} : vector<2x32xf32>, vector<32x128xf32>, vector<2x128xf32> -> vector<2x128xf32>
    %184 = vector.extract_strided_slice %179 {offsets = [0, 0], sizes = [2, 128], strides = [1, 1]} : vector<2x1024xf32> to vector<2x128xf32>
    %185 = arith.addf %184, %183 : vector<2x128xf32>
    %186 = arith.negf %185 : vector<2x128xf32>
    %187 = math.exp %186 : vector<2x128xf32>
    %cst_44 = arith.constant 1.000000e+00 : f32
    %188 = vector.broadcast %cst_44 : f32 to vector<2x128xf32>
    %189 = arith.addf %188, %187 : vector<2x128xf32>
    %190 = arith.divf %188, %189 : vector<2x128xf32>
    %191 = vector.extract_strided_slice %190 {offsets = [0, 0], sizes = [2, 32], strides = [1, 1]} : vector<2x128xf32> to vector<2x32xf32>
    %192 = vector.extract_strided_slice %190 {offsets = [0, 32], sizes = [2, 32], strides = [1, 1]} : vector<2x128xf32> to vector<2x32xf32>
    %193 = vector.extract_strided_slice %190 {offsets = [0, 96], sizes = [2, 32], strides = [1, 1]} : vector<2x128xf32> to vector<2x32xf32>
    %194 = vector.extract_strided_slice %185 {offsets = [0, 64], sizes = [2, 32], strides = [1, 1]} : vector<2x128xf32> to vector<2x32xf32>
    %195 = math.tanh %194 : vector<2x32xf32>
    %196 = arith.mulf %192, %182 : vector<2x32xf32>
    %197 = arith.mulf %191, %195 : vector<2x32xf32>
    %198 = arith.addf %196, %197 : vector<2x32xf32>
    %199 = math.tanh %198 : vector<2x32xf32>
    %200 = arith.mulf %193, %199 : vector<2x32xf32>
    %201 = vector.extract_strided_slice %7 {offsets = [0, 0], sizes = [2, 1], strides = [1, 1]} : vector<2x128xi1> to vector<2x1xi1>
    %202 = vector.shape_cast %201 : vector<2x1xi1> to vector<2x1xi1>
    %203 = vector.broadcast %202 : vector<2x1xi1> to vector<2x32xi1>
    %204 = arith.select %203, %200, %181 : vector<2x32xi1>, vector<2x32xf32>
    %205 = vector.shape_cast %201 : vector<2x1xi1> to vector<2x1xi1>
    %206 = vector.broadcast %205 : vector<2x1xi1> to vector<2x32xi1>
    %207 = arith.select %206, %198, %182 : vector<2x32xi1>, vector<2x32xf32>
    %cst_45 = arith.constant dense<0.000000e+00> : vector<2x128xf32>
    %208 = tpu.matmul %204, %180, %cst_45 {dimension_numbers = #tpu.dot_dimension_numbers<[1], [0], [0], [1], [0, 0, 1, 1], [], []>} : vector<2x32xf32>, vector<32x128xf32>, vector<2x128xf32> -> vector<2x128xf32>
    %209 = vector.extract_strided_slice %179 {offsets = [0, 128], sizes = [2, 128], strides = [1, 1]} : vector<2x1024xf32> to vector<2x128xf32>
    %210 = arith.addf %209, %208 : vector<2x128xf32>
    %211 = arith.negf %210 : vector<2x128xf32>
    %212 = math.exp %211 : vector<2x128xf32>
    %cst_46 = arith.constant 1.000000e+00 : f32
    %213 = vector.broadcast %cst_46 : f32 to vector<2x128xf32>
    %214 = arith.addf %213, %212 : vector<2x128xf32>
    %215 = arith.divf %213, %214 : vector<2x128xf32>
    %216 = vector.extract_strided_slice %215 {offsets = [0, 0], sizes = [2, 32], strides = [1, 1]} : vector<2x128xf32> to vector<2x32xf32>
    %217 = vector.extract_strided_slice %215 {offsets = [0, 32], sizes = [2, 32], strides = [1, 1]} : vector<2x128xf32> to vector<2x32xf32>
    %218 = vector.extract_strided_slice %215 {offsets = [0, 96], sizes = [2, 32], strides = [1, 1]} : vector<2x128xf32> to vector<2x32xf32>
    %219 = vector.extract_strided_slice %210 {offsets = [0, 64], sizes = [2, 32], strides = [1, 1]} : vector<2x128xf32> to vector<2x32xf32>
    %220 = math.tanh %219 : vector<2x32xf32>
    %221 = arith.mulf %217, %207 : vector<2x32xf32>
    %222 = arith.mulf %216, %220 : vector<2x32xf32>
    %223 = arith.addf %221, %222 : vector<2x32xf32>
    %224 = math.tanh %223 : vector<2x32xf32>
    %225 = arith.mulf %218, %224 : vector<2x32xf32>
    %226 = vector.extract_strided_slice %7 {offsets = [0, 1], sizes = [2, 1], strides = [1, 1]} : vector<2x128xi1> to vector<2x1xi1>
    %227 = vector.shape_cast %226 : vector<2x1xi1> to vector<2x1xi1>
    %228 = vector.broadcast %227 : vector<2x1xi1> to vector<2x32xi1>
    %229 = arith.select %228, %225, %204 : vector<2x32xi1>, vector<2x32xf32>
    %230 = vector.shape_cast %226 : vector<2x1xi1> to vector<2x1xi1>
    %231 = vector.broadcast %230 : vector<2x1xi1> to vector<2x32xi1>
    %232 = arith.select %231, %223, %207 : vector<2x32xi1>, vector<2x32xf32>
    %cst_47 = arith.constant dense<0.000000e+00> : vector<2x128xf32>
    %233 = tpu.matmul %229, %180, %cst_47 {dimension_numbers = #tpu.dot_dimension_numbers<[1], [0], [0], [1], [0, 0, 1, 1], [], []>} : vector<2x32xf32>, vector<32x128xf32>, vector<2x128xf32> -> vector<2x128xf32>
    %234 = vector.extract_strided_slice %179 {offsets = [0, 256], sizes = [2, 128], strides = [1, 1]} : vector<2x1024xf32> to vector<2x128xf32>
    %235 = arith.addf %234, %233 : vector<2x128xf32>
    %236 = arith.negf %235 : vector<2x128xf32>
    %237 = math.exp %236 : vector<2x128xf32>
    %cst_48 = arith.constant 1.000000e+00 : f32
    %238 = vector.broadcast %cst_48 : f32 to vector<2x128xf32>
    %239 = arith.addf %238, %237 : vector<2x128xf32>
    %240 = arith.divf %238, %239 : vector<2x128xf32>
    %241 = vector.extract_strided_slice %240 {offsets = [0, 0], sizes = [2, 32], strides = [1, 1]} : vector<2x128xf32> to vector<2x32xf32>
    %242 = vector.extract_strided_slice %240 {offsets = [0, 32], sizes = [2, 32], strides = [1, 1]} : vector<2x128xf32> to vector<2x32xf32>
    %243 = vector.extract_strided_slice %240 {offsets = [0, 96], sizes = [2, 32], strides = [1, 1]} : vector<2x128xf32> to vector<2x32xf32>
    %244 = vector.extract_strided_slice %235 {offsets = [0, 64], sizes = [2, 32], strides = [1, 1]} : vector<2x128xf32> to vector<2x32xf32>
    %245 = math.tanh %244 : vector<2x32xf32>
    %246 = arith.mulf %242, %232 : vector<2x32xf32>
    %247 = arith.mulf %241, %245 : vector<2x32xf32>
    %248 = arith.addf %246, %247 : vector<2x32xf32>
    %249 = math.tanh %248 : vector<2x32xf32>
    %250 = arith.mulf %243, %249 : vector<2x32xf32>
    %251 = vector.extract_strided_slice %7 {offsets = [0, 2], sizes = [2, 1], strides = [1, 1]} : vector<2x128xi1> to vector<2x1xi1>
    %252 = vector.shape_cast %251 : vector<2x1xi1> to vector<2x1xi1>
    %253 = vector.broadcast %252 : vector<2x1xi1> to vector<2x32xi1>
    %254 = arith.select %253, %250, %229 : vector<2x32xi1>, vector<2x32xf32>
    %255 = vector.shape_cast %251 : vector<2x1xi1> to vector<2x1xi1>
    %256 = vector.broadcast %255 : vector<2x1xi1> to vector<2x32xi1>
    %257 = arith.select %256, %248, %232 : vector<2x32xi1>, vector<2x32xf32>
    %cst_49 = arith.constant dense<0.000000e+00> : vector<2x128xf32>
    %258 = tpu.matmul %254, %180, %cst_49 {dimension_numbers = #tpu.dot_dimension_numbers<[1], [0], [0], [1], [0, 0, 1, 1], [], []>} : vector<2x32xf32>, vector<32x128xf32>, vector<2x128xf32> -> vector<2x128xf32>
    %259 = vector.extract_strided_slice %179 {offsets = [0, 384], sizes = [2, 128], strides = [1, 1]} : vector<2x1024xf32> to vector<2x128xf32>
    %260 = arith.addf %259, %258 : vector<2x128xf32>
    %261 = arith.negf %260 : vector<2x128xf32>
    %262 = math.exp %261 : vector<2x128xf32>
    %cst_50 = arith.constant 1.000000e+00 : f32
    %263 = vector.broadcast %cst_50 : f32 to vector<2x128xf32>
    %264 = arith.addf %263, %262 : vector<2x128xf32>
    %265 = arith.divf %263, %264 : vector<2x128xf32>
    %266 = vector.extract_strided_slice %265 {offsets = [0, 0], sizes = [2, 32], strides = [1, 1]} : vector<2x128xf32> to vector<2x32xf32>
    %267 = vector.extract_strided_slice %265 {offsets = [0, 32], sizes = [2, 32], strides = [1, 1]} : vector<2x128xf32> to vector<2x32xf32>
    %268 = vector.extract_strided_slice %265 {offsets = [0, 96], sizes = [2, 32], strides = [1, 1]} : vector<2x128xf32> to vector<2x32xf32>
    %269 = vector.extract_strided_slice %260 {offsets = [0, 64], sizes = [2, 32], strides = [1, 1]} : vector<2x128xf32> to vector<2x32xf32>
    %270 = math.tanh %269 : vector<2x32xf32>
    %271 = arith.mulf %267, %257 : vector<2x32xf32>
    %272 = arith.mulf %266, %270 : vector<2x32xf32>
    %273 = arith.addf %271, %272 : vector<2x32xf32>
    %274 = math.tanh %273 : vector<2x32xf32>
    %275 = arith.mulf %268, %274 : vector<2x32xf32>
    %276 = vector.extract_strided_slice %7 {offsets = [0, 3], sizes = [2, 1], strides = [1, 1]} : vector<2x128xi1> to vector<2x1xi1>
    %277 = vector.shape_cast %276 : vector<2x1xi1> to vector<2x1xi1>
    %278 = vector.broadcast %277 : vector<2x1xi1> to vector<2x32xi1>
    %279 = arith.select %278, %275, %254 : vector<2x32xi1>, vector<2x32xf32>
    %280 = vector.shape_cast %276 : vector<2x1xi1> to vector<2x1xi1>
    %281 = vector.broadcast %280 : vector<2x1xi1> to vector<2x32xi1>
    %282 = arith.select %281, %273, %257 : vector<2x32xi1>, vector<2x32xf32>
    %cst_51 = arith.constant dense<0.000000e+00> : vector<2x128xf32>
    %283 = tpu.matmul %279, %180, %cst_51 {dimension_numbers = #tpu.dot_dimension_numbers<[1], [0], [0], [1], [0, 0, 1, 1], [], []>} : vector<2x32xf32>, vector<32x128xf32>, vector<2x128xf32> -> vector<2x128xf32>
    %284 = vector.extract_strided_slice %179 {offsets = [0, 512], sizes = [2, 128], strides = [1, 1]} : vector<2x1024xf32> to vector<2x128xf32>
    %285 = arith.addf %284, %283 : vector<2x128xf32>
    %286 = arith.negf %285 : vector<2x128xf32>
    %287 = math.exp %286 : vector<2x128xf32>
    %cst_52 = arith.constant 1.000000e+00 : f32
    %288 = vector.broadcast %cst_52 : f32 to vector<2x128xf32>
    %289 = arith.addf %288, %287 : vector<2x128xf32>
    %290 = arith.divf %288, %289 : vector<2x128xf32>
    %291 = vector.extract_strided_slice %290 {offsets = [0, 0], sizes = [2, 32], strides = [1, 1]} : vector<2x128xf32> to vector<2x32xf32>
    %292 = vector.extract_strided_slice %290 {offsets = [0, 32], sizes = [2, 32], strides = [1, 1]} : vector<2x128xf32> to vector<2x32xf32>
    %293 = vector.extract_strided_slice %290 {offsets = [0, 96], sizes = [2, 32], strides = [1, 1]} : vector<2x128xf32> to vector<2x32xf32>
    %294 = vector.extract_strided_slice %285 {offsets = [0, 64], sizes = [2, 32], strides = [1, 1]} : vector<2x128xf32> to vector<2x32xf32>
    %295 = math.tanh %294 : vector<2x32xf32>
    %296 = arith.mulf %292, %282 : vector<2x32xf32>
    %297 = arith.mulf %291, %295 : vector<2x32xf32>
    %298 = arith.addf %296, %297 : vector<2x32xf32>
    %299 = math.tanh %298 : vector<2x32xf32>
    %300 = arith.mulf %293, %299 : vector<2x32xf32>
    %301 = vector.extract_strided_slice %7 {offsets = [0, 4], sizes = [2, 1], strides = [1, 1]} : vector<2x128xi1> to vector<2x1xi1>
    %302 = vector.shape_cast %301 : vector<2x1xi1> to vector<2x1xi1>
    %303 = vector.broadcast %302 : vector<2x1xi1> to vector<2x32xi1>
    %304 = arith.select %303, %300, %279 : vector<2x32xi1>, vector<2x32xf32>
    %305 = vector.shape_cast %301 : vector<2x1xi1> to vector<2x1xi1>
    %306 = vector.broadcast %305 : vector<2x1xi1> to vector<2x32xi1>
    %307 = arith.select %306, %298, %282 : vector<2x32xi1>, vector<2x32xf32>
    %cst_53 = arith.constant dense<0.000000e+00> : vector<2x128xf32>
    %308 = tpu.matmul %304, %180, %cst_53 {dimension_numbers = #tpu.dot_dimension_numbers<[1], [0], [0], [1], [0, 0, 1, 1], [], []>} : vector<2x32xf32>, vector<32x128xf32>, vector<2x128xf32> -> vector<2x128xf32>
    %309 = vector.extract_strided_slice %179 {offsets = [0, 640], sizes = [2, 128], strides = [1, 1]} : vector<2x1024xf32> to vector<2x128xf32>
    %310 = arith.addf %309, %308 : vector<2x128xf32>
    %311 = arith.negf %310 : vector<2x128xf32>
    %312 = math.exp %311 : vector<2x128xf32>
    %cst_54 = arith.constant 1.000000e+00 : f32
    %313 = vector.broadcast %cst_54 : f32 to vector<2x128xf32>
    %314 = arith.addf %313, %312 : vector<2x128xf32>
    %315 = arith.divf %313, %314 : vector<2x128xf32>
    %316 = vector.extract_strided_slice %315 {offsets = [0, 0], sizes = [2, 32], strides = [1, 1]} : vector<2x128xf32> to vector<2x32xf32>
    %317 = vector.extract_strided_slice %315 {offsets = [0, 32], sizes = [2, 32], strides = [1, 1]} : vector<2x128xf32> to vector<2x32xf32>
    %318 = vector.extract_strided_slice %315 {offsets = [0, 96], sizes = [2, 32], strides = [1, 1]} : vector<2x128xf32> to vector<2x32xf32>
    %319 = vector.extract_strided_slice %310 {offsets = [0, 64], sizes = [2, 32], strides = [1, 1]} : vector<2x128xf32> to vector<2x32xf32>
    %320 = math.tanh %319 : vector<2x32xf32>
    %321 = arith.mulf %317, %307 : vector<2x32xf32>
    %322 = arith.mulf %316, %320 : vector<2x32xf32>
    %323 = arith.addf %321, %322 : vector<2x32xf32>
    %324 = math.tanh %323 : vector<2x32xf32>
    %325 = arith.mulf %318, %324 : vector<2x32xf32>
    %326 = vector.extract_strided_slice %7 {offsets = [0, 5], sizes = [2, 1], strides = [1, 1]} : vector<2x128xi1> to vector<2x1xi1>
    %327 = vector.shape_cast %326 : vector<2x1xi1> to vector<2x1xi1>
    %328 = vector.broadcast %327 : vector<2x1xi1> to vector<2x32xi1>
    %329 = arith.select %328, %325, %304 : vector<2x32xi1>, vector<2x32xf32>
    %330 = vector.shape_cast %326 : vector<2x1xi1> to vector<2x1xi1>
    %331 = vector.broadcast %330 : vector<2x1xi1> to vector<2x32xi1>
    %332 = arith.select %331, %323, %307 : vector<2x32xi1>, vector<2x32xf32>
    %cst_55 = arith.constant dense<0.000000e+00> : vector<2x128xf32>
    %333 = tpu.matmul %329, %180, %cst_55 {dimension_numbers = #tpu.dot_dimension_numbers<[1], [0], [0], [1], [0, 0, 1, 1], [], []>} : vector<2x32xf32>, vector<32x128xf32>, vector<2x128xf32> -> vector<2x128xf32>
    %334 = vector.extract_strided_slice %179 {offsets = [0, 768], sizes = [2, 128], strides = [1, 1]} : vector<2x1024xf32> to vector<2x128xf32>
    %335 = arith.addf %334, %333 : vector<2x128xf32>
    %336 = arith.negf %335 : vector<2x128xf32>
    %337 = math.exp %336 : vector<2x128xf32>
    %cst_56 = arith.constant 1.000000e+00 : f32
    %338 = vector.broadcast %cst_56 : f32 to vector<2x128xf32>
    %339 = arith.addf %338, %337 : vector<2x128xf32>
    %340 = arith.divf %338, %339 : vector<2x128xf32>
    %341 = vector.extract_strided_slice %340 {offsets = [0, 0], sizes = [2, 32], strides = [1, 1]} : vector<2x128xf32> to vector<2x32xf32>
    %342 = vector.extract_strided_slice %340 {offsets = [0, 32], sizes = [2, 32], strides = [1, 1]} : vector<2x128xf32> to vector<2x32xf32>
    %343 = vector.extract_strided_slice %340 {offsets = [0, 96], sizes = [2, 32], strides = [1, 1]} : vector<2x128xf32> to vector<2x32xf32>
    %344 = vector.extract_strided_slice %335 {offsets = [0, 64], sizes = [2, 32], strides = [1, 1]} : vector<2x128xf32> to vector<2x32xf32>
    %345 = math.tanh %344 : vector<2x32xf32>
    %346 = arith.mulf %342, %332 : vector<2x32xf32>
    %347 = arith.mulf %341, %345 : vector<2x32xf32>
    %348 = arith.addf %346, %347 : vector<2x32xf32>
    %349 = math.tanh %348 : vector<2x32xf32>
    %350 = arith.mulf %343, %349 : vector<2x32xf32>
    %351 = vector.extract_strided_slice %7 {offsets = [0, 6], sizes = [2, 1], strides = [1, 1]} : vector<2x128xi1> to vector<2x1xi1>
    %352 = vector.shape_cast %351 : vector<2x1xi1> to vector<2x1xi1>
    %353 = vector.broadcast %352 : vector<2x1xi1> to vector<2x32xi1>
    %354 = arith.select %353, %350, %329 : vector<2x32xi1>, vector<2x32xf32>
    %355 = vector.shape_cast %351 : vector<2x1xi1> to vector<2x1xi1>
    %356 = vector.broadcast %355 : vector<2x1xi1> to vector<2x32xi1>
    %357 = arith.select %356, %348, %332 : vector<2x32xi1>, vector<2x32xf32>
    %cst_57 = arith.constant dense<0.000000e+00> : vector<2x128xf32>
    %358 = tpu.matmul %354, %180, %cst_57 {dimension_numbers = #tpu.dot_dimension_numbers<[1], [0], [0], [1], [0, 0, 1, 1], [], []>} : vector<2x32xf32>, vector<32x128xf32>, vector<2x128xf32> -> vector<2x128xf32>
    %359 = vector.extract_strided_slice %179 {offsets = [0, 896], sizes = [2, 128], strides = [1, 1]} : vector<2x1024xf32> to vector<2x128xf32>
    %360 = arith.addf %359, %358 : vector<2x128xf32>
    %361 = arith.negf %360 : vector<2x128xf32>
    %362 = math.exp %361 : vector<2x128xf32>
    %cst_58 = arith.constant 1.000000e+00 : f32
    %363 = vector.broadcast %cst_58 : f32 to vector<2x128xf32>
    %364 = arith.addf %363, %362 : vector<2x128xf32>
    %365 = arith.divf %363, %364 : vector<2x128xf32>
    %366 = vector.extract_strided_slice %365 {offsets = [0, 0], sizes = [2, 32], strides = [1, 1]} : vector<2x128xf32> to vector<2x32xf32>
    %367 = vector.extract_strided_slice %365 {offsets = [0, 32], sizes = [2, 32], strides = [1, 1]} : vector<2x128xf32> to vector<2x32xf32>
    %368 = vector.extract_strided_slice %365 {offsets = [0, 96], sizes = [2, 32], strides = [1, 1]} : vector<2x128xf32> to vector<2x32xf32>
    %369 = vector.extract_strided_slice %360 {offsets = [0, 64], sizes = [2, 32], strides = [1, 1]} : vector<2x128xf32> to vector<2x32xf32>
    %370 = math.tanh %369 : vector<2x32xf32>
    %371 = arith.mulf %367, %357 : vector<2x32xf32>
    %372 = arith.mulf %366, %370 : vector<2x32xf32>
    %373 = arith.addf %371, %372 : vector<2x32xf32>
    %374 = math.tanh %373 : vector<2x32xf32>
    %375 = arith.mulf %368, %374 : vector<2x32xf32>
    %376 = vector.extract_strided_slice %7 {offsets = [0, 7], sizes = [2, 1], strides = [1, 1]} : vector<2x128xi1> to vector<2x1xi1>
    %377 = vector.shape_cast %376 : vector<2x1xi1> to vector<2x1xi1>
    %378 = vector.broadcast %377 : vector<2x1xi1> to vector<2x32xi1>
    %379 = arith.select %378, %375, %354 : vector<2x32xi1>, vector<2x32xf32>
    %c32 = arith.constant 32 : index
    %c0_59 = arith.constant 0 : index
    %380 = vector.load %arg3[%c32, %c0_59] : memref<72x128xf32, #tpu.memory_space<vmem>>, vector<32x128xf32>
    %c64 = arith.constant 64 : index
    %c0_60 = arith.constant 0 : index
    %381 = vector.load %arg3[%c64, %c0_60] : memref<72x128xf32, #tpu.memory_space<vmem>>, vector<1x128xf32>
    %cst_61 = arith.constant dense<0.000000e+00> : vector<2x128xf32>
    %382 = tpu.matmul %379, %380, %cst_61 {dimension_numbers = #tpu.dot_dimension_numbers<[1], [0], [0], [1], [0, 0, 1, 1], [], []>} : vector<2x32xf32>, vector<32x128xf32>, vector<2x128xf32> -> vector<2x128xf32>
    %383 = vector.broadcast %381 : vector<1x128xf32> to vector<2x128xf32>
    %384 = arith.addf %382, %383 : vector<2x128xf32>
    %c0_62 = arith.constant 0 : index
    %c0_63 = arith.constant 0 : index
    %385 = vector.load %arg4[%c0_62, %c0_63] : memref<2x128xf32, #tpu.memory_space<vmem>>, vector<2x128xf32>
    tpu.vector_store %arg4[%c0_62, %c0_63], %384 {strides = array<i32>} : memref<2x128xf32, #tpu.memory_space<vmem>>, vector<2x128xf32>,
    return
  }
}

</mosaic_0001>

<bundles_post_ra>
// kernel: recurrent_conv_forward.1
= control target key start
LH: loop header
LB: loop body
LE: loop exit
PB: predicated region body
PF: predicated region fallthrough
CT: control target
= control target key end

     0   :  { %9 = vsyncpa [#allocation5], 0  ;;  %s2352_s0 = inlined_call_operand.vmem [shape: f32[16], index: 0, kind: input, shape index: {}]   ;;  %s2353_s1 = inlined_call_operand.vmem [shape: f32[3,2,128], index: 1, kind: input, shape index: {}]   ;;  %s2354_s2 = inlined_call_operand.hbm [shape: bf16[80,1024], index: 2, kind: input, shape index: {}]   ;;  %s2355_s3 = inlined_call_operand.vmem [shape: f32[72,128], index: 3, kind: input, shape index: {}]   ;;  %s2356_s4 = inlined_call_operand.hbm [shape: f32[2,128], index: 4, kind: output, shape index: {}]  }
   0x1   :  { %10 = vsyncpa [#allocation3], 0 }
   0x2   :  { %11 = vsyncpa [#allocation4], 0  ;;  %s18_s17 = sshll.u32 %s2352_s0, 4  ;;  %s19_s17 = int_to_ptr.vmem [resolvable:$true] %s18_s17 }
   0x3   :  { %s1907_s18 = scalar_lea.vmem %s19_s17, 16  ;;  %p1912_p1 = scmp.lt.s32.totalorder %s19_s17, %s19_s17 }
   0x4   :  { %p1908_p0 = scmp.ne.s32.totalorder %s19_s17, %s1907_s18  ;;  %p1913_p2 = scmp.lt.s32.totalorder %s1907_s18, %s1907_s18 }
   0x6   :  { %p1914_p3 = por %p1913_p2, %p1912_p1 }
   0x8   :  { %p1915_p4 = pnand %p1914_p3, %p1908_p0 }
   0xa   :  { %1918 = shalt.err (!%p1915_p4)
}
   0xb   :  { %s1969_s19 = smov [#allocation2]   ;;  %s1970_s20 = smov [#allocation6]  }
   0xc   :  { %21 = dma.vmem_to_smem %s19_s17, 16, %s1969_s19, [#allocation5]  }
   0xd   :  { %s29_s21 = sshll.u32 %s1970_s20, 4  ;;  %s1919_s24 = scalar_lea.hbm %s2354_s2, 5120  ;;  %s30_s21 = int_to_ptr.vmem [resolvable:$true] %s29_s21 }
   0xe   :  { %p1920_p5 = scmp.ne.s32.totalorder %s2354_s2, %s1919_s24  ;;  %p1923_p6 = scmp.lt.u32.totalorder %s1919_s24, %s2354_s2 }
  0x10   :  { %p1925_p7 = pnand %p1923_p6, %p1920_p5 }
  0x12   :  { %1928 = shalt.err (!%p1925_p7)
}
  0x13   :  { %s1929_s28 = scalar_lea.vmem %s30_s21, 5120  ;;  %p1934_p9 = scmp.lt.s32.totalorder %s30_s21, %s30_s21 }
  0x14   :  { %p1930_p8 = scmp.ne.s32.totalorder %s30_s21, %s1929_s28  ;;  %p1935_p10 = scmp.lt.s32.totalorder %s1929_s28, %s1929_s28 }
  0x16   :  { %p1936_p11 = por %p1935_p10, %p1934_p9 }
  0x18   :  { %p1937_p12 = pnand %p1936_p11, %p1930_p8 }
  0x1a   :  { %1940 = shalt.err (!%p1937_p12)
}
  0x1b   :  { %s1971_s29 = smov 512   ;;  %s1972_s30 = smov 32  }
  0x1c   :  { %35 = dma.hbm_to_vmem [thread:$0]  %s2354_s2, 5120, %s30_s21, [#allocation3], %s1971_s29, %s1971_s29, %s1972_s30  }
  0x1d   :  { %1963 = dma.done.wait [#allocation5], 16  }
  0x1e   :  { %1964 = vsyncadd [#allocation5], 4294967280 }
  0x1f   :  { %1965 = dma.done.wait [#allocation3], 5120  }
  0x20   :  { %1966 = vsyncadd [#allocation3], 4294962176 }
  0x21   :  { %44 = sfence }
  0x22   :  { %v2031_v0 = vld [vmem:[%s2353_s1] sm:$0x3]  ;;  %s2033_s9 = sld [smem:[#allocation2]]  ;;  %s2035_s10 = sld [smem:[#allocation2 + $0x4]]  ;;  %v2043_v2 = vld [vmem:[%s2353_s1 + $0x2] sm:$0x3] }
  0x23   :  { %v181_v1 = vld [vmem:[#allocation6] sm:$0xff]  ;;  %s2037_s11 = sld [smem:[#allocation2 + $0x8]]  ;;  %s1973_s12 = smov 127   ;;  %v182_v4 = vld [vmem:[#allocation6 + $0x8] sm:$0xff]  ;;  %v1974_v12 = vmov 0   ;;  %v2092_v52 = vld [vmem:[#allocation6 + $0x10] sm:$0xff] }
  0x24   :  { %52 = vrot.lane.b32.xlu0 %v2031_v0, %s1973_s12  ;;  %s2045_s14 = sld [smem:[#allocation2 + $0xc]]  ;;  %v185_v3 = vld [vmem:[#allocation6 + $0x20] sm:$0xff]  ;;  %v186_v5 = vld [vmem:[#allocation6 + $0x28] sm:$0xff]  ;;  %s2047_s15 = sld [smem:[#allocation2 + $0x1]]  ;;  %457 = vmatprep.mubr.bf16.mxu0 %v1974_v12  ;;  %v2097_v55 = vld [vmem:[#allocation6 + $0x30] sm:$0xff]  ;;  %vm421_vm9 = vcmask 654336  }
  0x25   :  { %v1559_v6 = vcombine.high %v181_v1, %v185_v3  ;;  %v1561_v7 = vcombine.high %v182_v4, %v186_v5  ;;  %v1558_v8 = vcombine.low %v181_v1, %v185_v3  ;;  %v1560_v9 = vcombine.low %v182_v4, %v186_v5  ;;  %v189_v10 = vld [vmem:[#allocation6 + $0x40] sm:$0xff]  ;;  %s2050_s16 = sld [smem:[#allocation2 + $0x5]]  ;;  %v190_v14 = vld [vmem:[#allocation6 + $0x48] sm:$0xff]  ;;  %498 = vmatprep.mubr.bf16.mxu1 %v1974_v12  ;;  %s2056_s17 = sld [smem:[#allocation2 + $0x9]]  ;;  %v2099_v56 = vld [vmem:[#allocation6 + $0x18] sm:$0xff] }
  0x26   :  { %v193_v11 = vld [vmem:[#allocation6 + $0x60] sm:$0xff]  ;;  %v194_v15 = vld [vmem:[#allocation6 + $0x68] sm:$0xff]  ;;  %1835 = vset.pattern.permute.xlu0 %v1974_v12  ;;  %s2059_s18 = sld [smem:[#allocation2 + $0xd]]  ;;  %v2101_v57 = vld [vmem:[#allocation6 + $0x38] sm:$0xff]  ;;  %v1562_v1 = vcombine.low %v2092_v52, %v2097_v55  ;;  %s2111_s19 = sld [smem:[#allocation2 + $0x2]]  ;;  %vm1976_vm10 = vmmov 0  }
  0x27   :  { %v1567_v13 = vcombine.high %v189_v10, %v193_v11  ;;  %425 = vmatprep.subr.bf16.mxu0 %v1559_v6  ;;  %v1569_v16 = vcombine.high %v190_v14, %v194_v15  ;;  %v197_v17 = vld [vmem:[#allocation6 + $0x80] sm:$0xff]  ;;  %466 = vmatprep.subr.bf16.mxu1 %v1561_v7  ;;  %v1566_v20 = vcombine.low %v189_v10, %v193_v11  ;;  %v198_v26 = vld [vmem:[#allocation6 + $0x88] sm:$0xff]  ;;  %s2113_s20 = sld [smem:[#allocation2 + $0x3]]  ;;  %s2115_s21 = sld [smem:[#allocation2 + $0x6]]  ;;  %vm593_vm13 = vcmask 261120  }
  0x28   :  { %54 = vrot.lane.b32.xlu0 %v2043_v2, %s1973_s12  ;;  %v201_v18 = vld [vmem:[#allocation6 + $0xa0] sm:$0xff]  ;;  %v57_v19 = vstv %s2033_s9  ;;  %426 = vmatpush1.bf16.msra.mxu0 %v1558_v8  ;;  %v87_v21 = vstv %s2035_s10  ;;  %v1568_v22 = vcombine.low %v190_v14, %v194_v15  ;;  %v202_v27 = vld [vmem:[#allocation6 + $0xa8] sm:$0xff]  ;;  %v1564_v3 = vcombine.low %v2099_v56, %v2101_v57  ;;  %s2117_s22 = sld [smem:[#allocation2 + $0x7]]  ;;  %s2119_s23 = sld [smem:[#allocation2 + $0xa]] }
  0x29   :  { %467 = vmatpush1.bf16.msra.mxu1 %v1560_v9  ;;  %427 = vmatprep.subr.bf16.mxu0 %v1567_v13  ;;  %v1575_v23 = vcombine.high %v197_v17, %v201_v18  ;;  %v117_v24 = vstv %s2037_s11  ;;  %v58_v25 = vmul.f32 %v57_v19, %v2031_v0  ;;  %v88_v29 = vmul.f32 %v87_v21, %v2031_v0  ;;  %v205_v37 = vld [vmem:[#allocation6 + $0xc0] sm:$0xff]  ;;  %v206_v39 = vld [vmem:[#allocation6 + $0xc8] sm:$0xff]  ;;  %s2121_s24 = sld [smem:[#allocation2 + $0xe]]  ;;  %s2123_s25 = sld [smem:[#allocation2 + $0xb]] }
  0x2a   :  { %468 = vmatprep.subr.bf16.mxu1 %v1569_v16  ;;  %v147_v28 = vstv %s2045_s14  ;;  %v63_v30 = vstv %s2047_s15  ;;  %v1574_v33 = vcombine.low %v197_v17, %v201_v18  ;;  %v118_v34 = vmul.f32 %v117_v24, %v2031_v0  ;;  %v209_v38 = vld [vmem:[#allocation6 + $0xe0] sm:$0xff]  ;;  %v210_v44 = vld [vmem:[#allocation6 + $0xe8] sm:$0xff]  ;;  %s2125_s26 = sld [smem:[#allocation2 + $0xf]] }
  0x2b   :  { %v64_v31 = vmul.f32 %v2043_v2, %v63_v30  ;;  %v93_v32 = vstv %s2050_s16  ;;  %v1577_v36 = vcombine.high %v198_v26, %v202_v27  ;;  %v148_v40 = vmul.f32 %v147_v28, %v2031_v0  ;;  %v213_v45 = vld [vmem:[#allocation6 + $0x100] sm:$0xff]  ;;  %v214_v50 = vld [vmem:[#allocation6 + $0x108] sm:$0xff] }
  0x2c   :  { %428 = vmatpush1.bf16.msra.mxu0 %v1566_v20  ;;  %v94_v35 = vmul.f32 %v2043_v2, %v93_v32  ;;  %v123_v41 = vstv %s2056_s17  ;;  %v1576_v43 = vcombine.low %v198_v26, %v202_v27  ;;  %v217_v46 = vld [vmem:[#allocation6 + $0x120] sm:$0xff]  ;;  %v153_v48 = vstv %s2059_s18  ;;  %v218_v51 = vld [vmem:[#allocation6 + $0x128] sm:$0xff] }
  0x2d   :  { %469 = vmatpush1.bf16.msra.mxu1 %v1568_v22  ;;  %429 = vmatprep.subr.bf16.mxu0 %v1575_v23  ;;  %v2084_v42 = vadd.f32 %v64_v31, %v58_v25  ;;  %v124_v47 = vmul.f32 %v2043_v2, %v123_v41  ;;  %v154_v53 = vmul.f32 %v2043_v2, %v153_v48  ;;  %v69_v9 = vstv %s2111_s19 }
  0x2e   :  { %v2090_v49 = vadd.f32 %v94_v35, %v88_v29  ;;  %470 = vmatprep.subr.bf16.mxu1 %v1577_v36  ;;  %v1583_v54 = vcombine.high %v205_v37, %v209_v38  ;;  %v1585_v59 = vcombine.high %v206_v39, %v210_v44  ;;  %v1582_v60 = vcombine.low %v205_v37, %v209_v38 }
  0x2f   :  { %v125_v58 = vadd.f32 %v124_v47, %v118_v34  ;;  %v1584_v61 = vcombine.low %v206_v39, %v210_v44  ;;  %v155_v62 = vadd.f32 %v154_v53, %v148_v40  ;;  %v1591_v63 = vcombine.high %v213_v45, %v217_v46 }
  0x30   :  { %430 = vmatpush1.bf16.msra.mxu0 %v1574_v33  ;;  %v1593_v0 = vcombine.high %v214_v50, %v218_v51  ;;  %v1590_v4 = vcombine.low %v213_v45, %v217_v46  ;;  %v1592_v5 = vcombine.low %v214_v50, %v218_v51  ;;  %v1563_v6 = vcombine.high %v2092_v52, %v2097_v55 }
  0x31   :  { %471 = vmatpush1.bf16.msra.mxu1 %v1576_v43  ;;  %431 = vmatprep.subr.bf16.mxu0 %v1583_v54  ;;  %v1565_v7 = vcombine.high %v2099_v56, %v2101_v57  ;;  %v60_v8 = vmul.f32 %v2043_v2, %v57_v19  ;;  %v90_v10 = vmul.f32 %v2043_v2, %v87_v21  ;;  %v99_v11 = vstv %s2115_s21 }
  0x32   :  { %472 = vmatprep.subr.bf16.mxu1 %v1585_v59  ;;  %v75_v13 = vstv %s2113_s20  ;;  %v120_v14 = vmul.f32 %v2043_v2, %v117_v24  ;;  %v129_v15 = vstv %s2119_s23  ;;  %v159_v16 = vstv %s2121_s24  ;;  %s1986_s20 = smov [#allocation7]  }
  0x33   :  { %v105_v18 = vstv %s2117_s22  ;;  %v135_v20 = vstv %s2123_s25  ;;  %v150_v22 = vmul.f32 %v2043_v2, %v147_v28  ;;  %v165_v19 = vstv %s2125_s26  ;;  %s1531_s21 = sshll.u32 %s1986_s20, 4  ;;  %s1532_s21 = int_to_ptr.vmem [resolvable:$true] %s1531_s21 }
  0x34   :  { %432 = vmatpush1.bf16.msra.mxu0 %v1582_v60  ;;  %v176_v36 = vlaneseq  ;;  %s1941_s22 = scalar_lea.vmem %s1532_s21, 32  ;;  %p1946_p0 = scmp.lt.s32.totalorder %s1532_s21, %s1532_s21 }
  0x35   :  { %473 = vmatpush1.bf16.msra.mxu1 %v1584_v61  ;;  %433 = vmatprep.subr.bf16.mxu0 %v1591_v63  ;;  %p1942_p13 = scmp.ne.s32.totalorder %s1532_s21, %s1941_s22  ;;  %p1947_p1 = scmp.lt.s32.totalorder %s1941_s22, %s1941_s22 }
  0x36   :  { %474 = vmatprep.subr.bf16.mxu1 %v1593_v0 }
  0x37   :  { %p1948_p2 = por %p1947_p1, %p1946_p0 }
  0x38   :  { %434 = vmatpush1.bf16.msra.mxu0 %v1590_v4 }
  0x39   :  { %475 = vmatpush1.bf16.msra.mxu1 %v1592_v5  ;;  %507 = vmatprep.subr.bf16.mxu0 %v1563_v6  ;;  %p1949_p3 = pnand %p1948_p2, %p1942_p13 }
  0x3a   :  { %548 = vmatprep.subr.bf16.mxu1 %v1565_v7 }
  0x96   :  { %v53_v17 = vpop.permute.xlu0 %52 }
  0x97   :  { %v66_v23 = vmul.f32 %v63_v30, %v53_v17  ;;  %v70_v25 = vmul.f32 %v69_v9, %v53_v17  ;;  %v96_v21 = vmul.f32 %v93_v32, %v53_v17  ;;  %v100_v26 = vmul.f32 %v99_v11, %v53_v17 }
  0x98   :  { %v126_v27 = vmul.f32 %v123_v41, %v53_v17  ;;  %v130_v29 = vmul.f32 %v129_v15, %v53_v17  ;;  %v156_v24 = vmul.f32 %v153_v48, %v53_v17  ;;  %v160_v31 = vmul.f32 %v159_v16, %v53_v17 }
  0x99   :  { %v67_v33 = vadd.f32 %v66_v23, %v60_v8  ;;  %v71_v34 = vadd.f32 %v70_v25, %v2084_v42  ;;  %v101_v35 = vadd.f32 %v100_v26, %v2090_v49  ;;  %v97_v2 = vadd.f32 %v96_v21, %v90_v10  ;;  %v195_v21 = vld [vmem:[#allocation6 + $0x70] sm:$0xff]  ;;  %v192_v26 = vld [vmem:[#allocation6 + $0x58] sm:$0xff] }
  0x9a   :  { %v127_v28 = vadd.f32 %v126_v27, %v120_v14  ;;  %v55_v37 = vpop.permute.xlu0 %54  ;;  %v131_v30 = vadd.f32 %v130_v29, %v125_v58  ;;  %v161_v38 = vadd.f32 %v160_v31, %v155_v62  ;;  %v157_v41 = vadd.f32 %v156_v24, %v150_v22  ;;  %v196_v27 = vld [vmem:[#allocation6 + $0x78] sm:$0xff] }
  0x9b   :  { %v72_v39 = vmul.f32 %v69_v9, %v55_v37  ;;  %v76_v32 = vadd.f32 %v75_v13, %v71_v34  ;;  %v102_v40 = vmul.f32 %v99_v11, %v55_v37  ;;  %v106_v43 = vadd.f32 %v105_v18, %v101_v35  ;;  %v199_v34 = vld [vmem:[#allocation6 + $0x90] sm:$0xff] }
  0x9c   :  { %v132_v44 = vmul.f32 %v129_v15, %v55_v37  ;;  %v136_v45 = vadd.f32 %v135_v20, %v131_v30  ;;  %v162_v46 = vmul.f32 %v159_v16, %v55_v37  ;;  %v166_v51 = vadd.f32 %v165_v19, %v161_v38  ;;  %v203_v35 = vld [vmem:[#allocation6 + $0xb0] sm:$0xff] }
  0x9d   :  { %v73_v47 = vadd.f32 %v72_v39, %v67_v33  ;;  %vm78_vm0 = vcmp.ge.f32.partialorder %v76_v32, 0.0  ;;  %v79_v48 = vmul.f32 0.01, %v76_v32  ;;  %v103_v42 = vadd.f32 %v102_v40, %v97_v2  ;;  %v200_v2 = vld [vmem:[#allocation6 + $0x98] sm:$0xff]  ;;  %v207_v39 = vld [vmem:[#allocation6 + $0xd0] sm:$0xff] }
  0x9e   :  { %vm108_vm1 = vcmp.ge.f32.partialorder %v106_v43, 0.0  ;;  %v109_v49 = vmul.f32 0.01, %v106_v43  ;;  %v133_v50 = vadd.f32 %v132_v44, %v127_v28  ;;  %vm138_vm2 = vcmp.ge.f32.partialorder %v136_v45, 0.0  ;;  %v208_v40 = vld [vmem:[#allocation6 + $0xd8] sm:$0xff] }
  0x9f   :  { %v77_v53 = vadd.f32 %v75_v13, %v73_v47  ;;  %v107_v54 = vadd.f32 %v105_v18, %v103_v42  ;;  %v139_v58 = vmul.f32 0.01, %v136_v45  ;;  %v80_v59 = vsel %vm78_vm0, %v76_v32, %v79_v48  ;;  %v211_v32 = vld [vmem:[#allocation6 + $0xf0] sm:$0xff]  ;;  %v220_v44 = vld [vmem:[#allocation6 + $0x138] sm:$0xff] }
  0xa0   :  { %v110_v60 = vsel %vm108_vm1, %v106_v43, %v109_v49  ;;  %v137_v61 = vadd.f32 %v135_v20, %v133_v50  ;;  %v163_v62 = vadd.f32 %v162_v46, %v157_v41  ;;  %v169_v6 = vmul.f32 0.01, %v166_v51  ;;  %v212_v43 = vld [vmem:[#allocation6 + $0xf8] sm:$0xff]  ;;  %v589_v50 = vld [vmem:[%s2355_s3] sm:$0xff] }
  0xa1   :  { %vm81_vm3 = vcmp.ge.f32.partialorder %v77_v53, 0.0  ;;  %v82_v63 = vmul.f32 0.01, %v77_v53  ;;  %vm111_vm4 = vcmp.ge.f32.partialorder %v107_v54, 0.0  ;;  %v112_v0 = vmul.f32 0.01, %v107_v54 }
  0xa2   :  { %vm141_vm5 = vcmp.ge.f32.partialorder %v137_v61, 0.0  ;;  %v142_v4 = vmul.f32 0.01, %v137_v61  ;;  %v167_v5 = vadd.f32 %v165_v19, %v163_v62  ;;  %v140_v9 = vsel %vm138_vm2, %v136_v45, %v139_v58  ;;  %v191_v19 = vld [vmem:[#allocation6 + $0x50] sm:$0xff]  ;;  %v216_v41 = vld [vmem:[#allocation6 + $0x118] sm:$0xff] }
  0xa3   :  { %v83_v7 = vsel %vm81_vm3, %v77_v53, %v82_v63  ;;  %v113_v8 = vsel %vm111_vm4, %v107_v54, %v112_v0  ;;  %vm168_vm6 = vcmp.ge.f32.partialorder %v166_v51, 0.0  ;;  %v177_v16 = vand.u32 127, %v176_v36  ;;  %v204_v36 = vld [vmem:[#allocation6 + $0xb8] sm:$0xff]  ;;  %v591_v58 = vld [vmem:[%s2355_s3 + $0x10] sm:$0xff]  ;;  %v1542_v62 = vld [vmem:[%s2353_s1 + $0x4] sm:$0x3] }
  0xa4   :  { %v84_v10 = vmax.f32 %v80_v59, %v83_v7  ;;  %v114_v11 = vmax.f32 %v110_v60, %v113_v8  ;;  %v143_v13 = vsel %vm141_vm5, %v137_v61, %v142_v4  ;;  %vm171_vm7 = vcmp.ge.f32.partialorder %v167_v5, 0.0  ;;  %v592_v59 = vld [vmem:[%s2355_s3 + $0x18] sm:$0xff]  ;;  %s1978_s1 = smov 64  }
  0xa5   :  { %v172_v14 = vmul.f32 0.01, %v167_v5  ;;  %v144_v15 = vmax.f32 %v140_v9, %v143_v13  ;;  %v170_v18 = vsel %vm168_vm6, %v166_v51, %v169_v6  ;;  %vm178_vm8 = vcmp.eq.s32.totalorder %v177_v16, 64  ;;  %v590_v51 = vld [vmem:[%s2355_s3 + $0x8] sm:$0xff] }
  0xa6   :  { %v115_v17 = vadd.f32 %v114_v11, %v84_v10  ;;  %v1571_v31 = vcombine.high %v191_v19, %v195_v21  ;;  %v1573_v33 = vcombine.high %v192_v26, %v196_v27  ;;  %v1570_v28 = vcombine.low %v191_v19, %v195_v21 }
  0xa7   :  { %v173_v20 = vsel %vm171_vm7, %v167_v5, %v172_v14  ;;  %v1572_v37 = vcombine.low %v192_v26, %v196_v27  ;;  %v1579_v30 = vcombine.high %v199_v34, %v203_v35  ;;  %v1581_v38 = vcombine.high %v200_v2, %v204_v36 }
  0xa8   :  { %v145_v22 = vadd.f32 %v144_v15, %v115_v17  ;;  %v174_v23 = vmax.f32 %v170_v18, %v173_v20  ;;  %v1578_v52 = vcombine.low %v199_v34, %v203_v35  ;;  %v1580_v55 = vcombine.low %v200_v2, %v204_v36 }
  0xa9   :  { %v1587_v56 = vcombine.high %v207_v39, %v211_v32  ;;  %v1589_v57 = vcombine.high %v208_v40, %v212_v43  ;;  %v1586_v45 = vcombine.low %v207_v39, %v211_v32  ;;  %v1588_v46 = vcombine.low %v208_v40, %v212_v43 }
  0xaa   :  { %v175_v25 = vadd.f32 %v174_v23, %v145_v22  ;;  %v1597_v48 = vcombine.high %v216_v41, %v220_v44  ;;  %v1596_v49 = vcombine.low %v216_v41, %v220_v44  ;;  %v2174_v53 = vpack.c.bf16 %v590_v51, %v589_v50 }
  0xab   :  { %v1975_v54 = vmov 0.0|0.0   ;;  %v2187_v60 = vpack.c.bf16 %v592_v59, %v591_v58  ;;  %v1977_v61 = vmov 0.0   ;;  %vm51_vm11 = vcmp.gt.f32.partialorder %v1542_v62, 0.5 }
  0xac   :  { %v179_v29 = vsel %vm178_vm8, 1.0, %v175_v25  ;;  %v2211_v63 = vsel %vm51_vm11, 1, %v1974_v12  ;;  %v1980_v58 = vmov 2  }
  0xad   :  { %v180_v24 = vpack.c.bf16 %v179_v29, %v179_v29  ;;  %694 = vperm.xlu0 %1835, %v2211_v63  }
  0xaf   :  { %1598 = vmatmul.mubr.msk.bf16.vlgmr.msra.gmra.mrb[0].mxu0 %vm421_vm9, %v180_v24  ;;  %1599 = vmatmul.mubr.msk.bf16.vlgmr.msra.gmra.mrb[0].mxu1 %vm421_vm9, %v180_v24 }
  0xb0   :  { %508 = vmatpush1.bf16.msra.mxu0 %v1562_v1  ;;  %549 = vmatpush1.bf16.msra.mxu1 %v1564_v3  ;;  %v215_v1 = vld [vmem:[#allocation6 + $0x110] sm:$0xff] }
  0xb1   :  { %509 = vmatprep.subr.bf16.mxu0 %v1571_v31  ;;  %550 = vmatprep.subr.bf16.mxu1 %v1573_v33  ;;  %v219_v3 = vld [vmem:[#allocation6 + $0x130] sm:$0xff] }
  0xb2   :  { %539 = vmatprep.mubr.bf16.mxu0 %v1974_v12  ;;  %580 = vmatprep.mubr.bf16.mxu1 %v1974_v12  ;;  %v1595_v47 = vcombine.high %v215_v1, %v219_v3  ;;  %v1594_v42 = vcombine.low %v215_v1, %v219_v3 }
  0xb4   :  { %510 = vmatpush1.bf16.msra.mxu0 %v1570_v28  ;;  %551 = vmatpush1.bf16.msra.mxu1 %v1572_v37 }
  0xb5   :  { %511 = vmatprep.subr.bf16.mxu0 %v1579_v30  ;;  %552 = vmatprep.subr.bf16.mxu1 %v1581_v38  ;;  %v1979_v38 = vmov 1  }
  0xb6   :  { %1836 = vset.pattern.permute.xlu0 %v1979_v38 }
  0xb8   :  { %512 = vmatpush1.bf16.msra.mxu0 %v1578_v52  ;;  %553 = vmatpush1.bf16.msra.mxu1 %v1580_v55 }
  0xb9   :  { %513 = vmatprep.subr.bf16.mxu0 %v1587_v56  ;;  %554 = vmatprep.subr.bf16.mxu1 %v1589_v57 }
  0xbc   :  { %514 = vmatpush1.bf16.msra.mxu0 %v1586_v45  ;;  %555 = vmatpush1.bf16.msra.mxu1 %v1588_v46 }
  0xbd   :  { %515 = vmatprep.subr.bf16.mxu0 %v1595_v47  ;;  %556 = vmatprep.subr.bf16.mxu1 %v1597_v48 }
  0xc0   :  { %516 = vmatpush1.bf16.msra.mxu0 %v1594_v42  ;;  %557 = vmatpush1.bf16.msra.mxu1 %v1596_v49 }
  0xc1   :  { %1763 = vmatprep.subr.bf16.mxu0 %v1975_v54  ;;  %1769 = vmatprep.subr.bf16.mxu1 %v1975_v54 }
  0xc3   :  { %1600 = vmatmul.mubr.msk.bf16.vlgmr.msra.gmra.mrb[4].mxu0 %vm421_vm9, %v180_v24  ;;  %1601 = vmatmul.mubr.msk.bf16.vlgmr.msra.gmra.mrb[4].mxu1 %vm421_vm9, %v180_v24 }
  0xc4   :  { %1765 = vmatpush3.bf16.msra.mxu0 %v2174_v53  ;;  %1672 = vmatprep.mubr.msk.f32.mxu0 %vm1976_vm10, %v1977_v61 }
  0xc5   :  { %1766 = vmatprep.subr.bf16.mxu0 %v1975_v54  ;;  %1771 = vmatpush3.bf16.msra.mxu1 %v2174_v53 }
  0xc6   :  { %1772 = vmatprep.subr.bf16.mxu1 %v1975_v54  ;;  %1683 = vmatprep.mubr.msk.f32.mxu1 %vm1976_vm10, %v1977_v61 }
  0xc8   :  { %1768 = vmatpush3.bf16.msra.mxu0 %v2187_v60 }
  0xc9   :  { %1774 = vmatpush3.bf16.msra.mxu1 %v2187_v60  ;;  %1775 = vmatprep.subr.bf16.mxu0 %v1975_v54 }
  0xca   :  { %1781 = vmatprep.subr.bf16.mxu1 %v1975_v54 }
  0xcb   :  { %1673 = vmatmul.mubr.f32.vlgmr.msra.gmra.mrb[8].mxu0 %v1977_v61 }
  0xcc   :  { %1777 = vmatpush3.bf16.msra.mxu0 %v2174_v53  ;;  %1694 = vmatprep.mubr.msk.f32.mxu0 %vm1976_vm10, %v1977_v61 }
  0xcd   :  { %1778 = vmatprep.subr.bf16.mxu0 %v1975_v54 }
  0xd0   :  { %1780 = vmatpush3.bf16.msra.mxu0 %v2187_v60 }
  0xd1   :  { %1787 = vmatprep.subr.bf16.mxu0 %v1975_v54 }
 0x12c   :  { %v695_v2 = vpop.permute.xlu0 %694 }
 0x12d   :  { %vm696_vm12 = vcmp.eq.s32.totalorder %v695_v2, 1 }
 0x182   :  { %v459_v0 = vpop.f32.mrb[0].mxu0  ;;  %v2214_v4 = vpop.f32.mrb[0].mxu1 }
 0x183   :  { %v461_v5 = vpop.f32.mrb[1].mxu0  ;;  %v2216_v6 = vpop.f32.mrb[1].mxu1 }
 0x184   :  { %v463_v7 = vpop.f32.mrb[2].mxu0  ;;  %v504_v8 = vpop.f32.mrb[2].mxu1 }
 0x185   :  { %v464_v9 = vpop.f32.mrb[3].mxu0  ;;  %v505_v10 = vpop.f32.mrb[3].mxu1 }
 0x196   :  { %v2218_v11 = vpop.f32.mrb[4].mxu0  ;;  %v2220_v13 = vpop.f32.mrb[4].mxu1 }
 0x197   :  { %v2222_v14 = vpop.f32.mrb[5].mxu0  ;;  %v2224_v12 = vpop.f32.mrb[5].mxu1 }
 0x198   :  { %v545_v15 = vpop.f32.mrb[6].mxu0  ;;  %v586_v16 = vpop.f32.mrb[6].mxu1 }
 0x199   :  { %v546_v17 = vpop.f32.mrb[7].mxu0  ;;  %v587_v18 = vpop.f32.mrb[7].mxu1 }
 0x19e   :  { %v663_v20 = vpop.f32.mrb[8].mxu0 }
 0x19f   :  { %v667_v22 = vadd.f32 %v663_v20, %v459_v0  ;;  %v1674_v23 = vpop.f32.mrb[9].mxu0 }
 0x1a1   :  { %1843 = vtanh.f32 %v667_v22  ;;  %v1602_v25 = vmul.f32 -1.442695, %v667_v22 }
 0x1a3   :  { %1845 = vpow2.f32 %v1602_v25 }
 0x1ab   :  { %v1844_v19 = vpop.eup %1843 }
 0x1ac   :  { %677 = vrot.lane.b32.xlu1 %v1844_v19, %s1978_s1 }
 0x1ad   :  { %v1846_v21 = vpop.eup %1845 }
 0x1ae   :  { %v671_v26 = vadd.f32 1.0, %v1846_v21 }
 0x1b0   :  { %1847 = vrcp.f32 %v671_v26 }
 0x1ba   :  { %v1848_v27 = vpop.eup %1847 }
 0x1bb   :  { %v675_v31 = vmul.f32 0.0, %v1848_v27 }
 0x21e   :  { %v678_v29 = vpop.permute.xlu1 %677 }
 0x21f   :  { %v680_v24 = vmul.f32 %v1848_v27, %v678_v29 }
 0x221   :  { %682 = vrot.lane.b32.xlu1 %v680_v24, %s1972_s30 }
 0x293   :  { %v683_v33 = vpop.permute.xlu1 %682 }
 0x294   :  { %v685_v34 = vadd.f32 %v683_v33, %v675_v31 }
 0x296   :  { %1849 = vtanh.f32 %v685_v34  ;;  %v698_v41 = vsel %vm696_vm12, %v685_v34, 0.0 }
 0x2a0   :  { %v1850_v35 = vpop.eup %1849 }
 0x2a1   :  { %688 = vrot.lane.b32.xlu1 %v1850_v35, %s1978_s1 }
 0x313   :  { %v689_v36 = vpop.permute.xlu1 %688 }
 0x314   :  { %v691_v28 = vmul.f32 %v1848_v27, %v689_v36  ;;  %v1981_v27 = vmov 3  }
 0x316   :  { %v697_v37 = vsel %vm696_vm12, %v691_v28, 0.0 }
 0x317   :  { %700 = vrot.lane.b32.xlu1 %v697_v37, %s1972_s30 }
 0x389   :  { %v701_v30 = vpop.permute.xlu1 %700 }
 0x38a   :  { %1684 = vmatmul.mubr.msk.f32.vlgmr.msra.gmra.mrb[8].mxu1 %vm593_vm13, %v701_v30 }
 0x38b   :  { %1783 = vmatpush3.bf16.msra.mxu1 %v2174_v53  ;;  %1705 = vmatprep.mubr.msk.f32.mxu1 %vm1976_vm10, %v1977_v61 }
 0x38c   :  { %1784 = vmatprep.subr.bf16.mxu1 %v1975_v54 }
 0x38f   :  { %1786 = vmatpush3.bf16.msra.mxu1 %v2187_v60 }
 0x390   :  { %1793 = vmatprep.subr.bf16.mxu1 %v1975_v54 }
 0x45d   :  { %v770_v39 = vpop.f32.mrb[8].mxu1 }
 0x45e   :  { %v774_v32 = vadd.f32 %v770_v39, %v461_v5  ;;  %v1685_v40 = vpop.f32.mrb[9].mxu1 }
 0x460   :  { %1851 = vtanh.f32 %v774_v32  ;;  %v1604_v52 = vmul.f32 -1.442695, %v774_v32 }
 0x462   :  { %1853 = vpow2.f32 %v1604_v52 }
 0x46a   :  { %v1852_v43 = vpop.eup %1851 }
 0x46b   :  { %784 = vrot.lane.b32.xlu0 %v1852_v43, %s1978_s1 }
 0x46c   :  { %v1854_v55 = vpop.eup %1853 }
 0x46d   :  { %v778_v56 = vadd.f32 1.0, %v1854_v55 }
 0x46f   :  { %800 = vperm.xlu0 %1836, %v2211_v63   ;;  %1855 = vrcp.f32 %v778_v56 }
 0x473   :  { %1837 = vset.pattern.permute.xlu0 %v1980_v58 }
 0x479   :  { %v1856_v57 = vpop.eup %1855 }
 0x47a   :  { %v782_v44 = vmul.f32 %v1856_v57, %v698_v41 }
 0x4dd   :  { %v785_v1 = vpop.permute.xlu0 %784 }
 0x4de   :  { %v787_v3 = vmul.f32 %v1856_v57, %v785_v1 }
 0x4e0   :  { %789 = vrot.lane.b32.xlu1 %v787_v3, %s1972_s30 }
 0x4ee   :  { %v801_v48 = vpop.permute.xlu0 %800 }
 0x4ef   :  { %vm802_vm14 = vcmp.eq.s32.totalorder %v801_v48, 1 }
 0x552   :  { %v790_v45 = vpop.permute.xlu1 %789 }
 0x553   :  { %v792_v46 = vadd.f32 %v790_v45, %v782_v44 }
 0x555   :  { %1857 = vtanh.f32 %v792_v46  ;;  %v804_v17 = vsel %vm802_vm14, %v792_v46, %v698_v41 }
 0x55f   :  { %v1858_v47 = vpop.eup %1857 }
 0x560   :  { %795 = vrot.lane.b32.xlu1 %v1858_v47, %s1978_s1 }
 0x5d2   :  { %v796_v42 = vpop.permute.xlu1 %795 }
 0x5d3   :  { %v798_v49 = vmul.f32 %v1856_v57, %v796_v42  ;;  %v1982_v57 = vmov 4  }
 0x5d5   :  { %v803_v50 = vsel %vm802_vm14, %v798_v49, %v697_v37 }
 0x5d6   :  { %806 = vrot.lane.b32.xlu1 %v803_v50, %s1972_s30 }
 0x648   :  { %v807_v51 = vpop.permute.xlu1 %806 }
 0x649   :  { %1695 = vmatmul.mubr.msk.f32.vlgmr.msra.gmra.mrb[10].mxu0 %vm593_vm13, %v807_v51 }
 0x64a   :  { %1789 = vmatpush3.bf16.msra.mxu0 %v2174_v53  ;;  %1716 = vmatprep.mubr.msk.f32.mxu0 %vm1976_vm10, %v1977_v61 }
 0x64b   :  { %1790 = vmatprep.subr.bf16.mxu0 %v1975_v54 }
 0x64e   :  { %1792 = vmatpush3.bf16.msra.mxu0 %v2187_v60 }
 0x64f   :  { %1799 = vmatprep.subr.bf16.mxu0 %v1975_v54 }
 0x71c   :  { %v876_v59 = vpop.f32.mrb[10].mxu0 }
 0x71d   :  { %v880_v62 = vadd.f32 %v876_v59, %v2214_v4  ;;  %v1696_v0 = vpop.f32.mrb[11].mxu0 }
 0x71f   :  { %1859 = vtanh.f32 %v880_v62  ;;  %v1606_v7 = vmul.f32 -1.442695, %v880_v62 }
 0x721   :  { %1861 = vpow2.f32 %v1606_v7 }
 0x729   :  { %v1860_v5 = vpop.eup %1859 }
 0x72a   :  { %890 = vrot.lane.b32.xlu0 %v1860_v5, %s1978_s1 }
 0x72b   :  { %v1862_v8 = vpop.eup %1861 }
 0x72c   :  { %v884_v9 = vadd.f32 1.0, %v1862_v8 }
 0x72e   :  { %906 = vperm.xlu0 %1837, %v2211_v63   ;;  %1863 = vrcp.f32 %v884_v9  ;;  %v1983_v9 = vmov 5  }
 0x732   :  { %1838 = vset.pattern.permute.xlu0 %v1981_v27 }
 0x738   :  { %v1864_v10 = vpop.eup %1863 }
 0x739   :  { %v888_v4 = vmul.f32 %v1864_v10, %v804_v17 }
 0x79c   :  { %v891_v15 = vpop.permute.xlu0 %890 }
 0x79d   :  { %v893_v16 = vmul.f32 %v1864_v10, %v891_v15 }
 0x79f   :  { %895 = vrot.lane.b32.xlu1 %v893_v16, %s1972_s30 }
 0x7ad   :  { %v907_v23 = vpop.permute.xlu0 %906 }
 0x7ae   :  { %vm908_vm15 = vcmp.eq.s32.totalorder %v907_v23, 1 }
 0x811   :  { %v896_v18 = vpop.permute.xlu1 %895 }
 0x812   :  { %v898_v20 = vadd.f32 %v896_v18, %v888_v4 }
 0x814   :  { %1865 = vtanh.f32 %v898_v20  ;;  %v910_v30 = vsel %vm908_vm15, %v898_v20, %v804_v17 }
 0x81e   :  { %v1866_v22 = vpop.eup %1865 }
 0x81f   :  { %901 = vrot.lane.b32.xlu1 %v1866_v22, %s1978_s1 }
 0x891   :  { %v902_v19 = vpop.permute.xlu1 %901 }
 0x892   :  { %v904_v25 = vmul.f32 %v1864_v10, %v902_v19 }
 0x894   :  { %v909_v21 = vsel %vm908_vm15, %v904_v25, %v803_v50 }
 0x895   :  { %912 = vrot.lane.b32.xlu1 %v909_v21, %s1972_s30 }
 0x907   :  { %v913_v26 = vpop.permute.xlu1 %912 }
 0x908   :  { %1706 = vmatmul.mubr.msk.f32.vlgmr.msra.gmra.mrb[10].mxu1 %vm593_vm13, %v913_v26 }
 0x909   :  { %1795 = vmatpush3.bf16.msra.mxu1 %v2174_v53  ;;  %1727 = vmatprep.mubr.msk.f32.mxu1 %vm1976_vm10, %v1977_v61 }
 0x90a   :  { %1796 = vmatprep.subr.bf16.mxu1 %v1975_v54 }
 0x90d   :  { %1798 = vmatpush3.bf16.msra.mxu1 %v2187_v60 }
 0x90e   :  { %1805 = vmatprep.subr.bf16.mxu1 %v1975_v54 }
 0x9db   :  { %v982_v29 = vpop.f32.mrb[10].mxu1 }
 0x9dc   :  { %v986_v24 = vadd.f32 %v982_v29, %v2216_v6  ;;  %v1707_v31 = vpop.f32.mrb[11].mxu1 }
 0x9de   :  { %1867 = vtanh.f32 %v986_v24  ;;  %v1608_v34 = vmul.f32 -1.442695, %v986_v24 }
 0x9e0   :  { %1869 = vpow2.f32 %v1608_v34 }
 0x9e8   :  { %v1868_v33 = vpop.eup %1867 }
 0x9e9   :  { %996 = vrot.lane.b32.xlu0 %v1868_v33, %s1978_s1  ;;  %v1984_v33 = vmov 6  }
 0x9ea   :  { %v1870_v35 = vpop.eup %1869 }
 0x9eb   :  { %v990_v2 = vadd.f32 1.0, %v1870_v35 }
 0x9ed   :  { %1012 = vperm.xlu0 %1838, %v2211_v63   ;;  %1871 = vrcp.f32 %v990_v2 }
 0x9f1   :  { %1839 = vset.pattern.permute.xlu0 %v1982_v57 }
 0x9f7   :  { %v1872_v36 = vpop.eup %1871 }
 0x9f8   :  { %v994_v6 = vmul.f32 %v1872_v36, %v910_v30 }
 0xa5b   :  { %v997_v28 = vpop.permute.xlu0 %996 }
 0xa5c   :  { %v999_v37 = vmul.f32 %v1872_v36, %v997_v28 }
 0xa5e   :  { %1001 = vrot.lane.b32.xlu1 %v999_v37, %s1972_s30 }
 0xa6c   :  { %v1013_v40 = vpop.permute.xlu0 %1012 }
 0xa6d   :  { %vm1014_vm0 = vcmp.eq.s32.totalorder %v1013_v40, 1 }
 0xad0   :  { %v1002_v38 = vpop.permute.xlu1 %1001 }
 0xad1   :  { %v1004_v39 = vadd.f32 %v1002_v38, %v994_v6 }
 0xad3   :  { %1873 = vtanh.f32 %v1004_v39  ;;  %v1016_v50 = vsel %vm1014_vm0, %v1004_v39, %v910_v30 }
 0xadd   :  { %v1874_v32 = vpop.eup %1873 }
 0xade   :  { %1007 = vrot.lane.b32.xlu1 %v1874_v32, %s1978_s1 }
 0xb50   :  { %v1008_v43 = vpop.permute.xlu1 %1007 }
 0xb51   :  { %v1010_v52 = vmul.f32 %v1872_v36, %v1008_v43 }
 0xb53   :  { %v1015_v55 = vsel %vm1014_vm0, %v1010_v52, %v909_v21 }
 0xb54   :  { %1018 = vrot.lane.b32.xlu1 %v1015_v55, %s1972_s30 }
 0xbc6   :  { %v1019_v56 = vpop.permute.xlu1 %1018 }
 0xbc7   :  { %1717 = vmatmul.mubr.msk.f32.vlgmr.msra.gmra.mrb[12].mxu0 %vm593_vm13, %v1019_v56 }
 0xbc8   :  { %1801 = vmatpush3.bf16.msra.mxu0 %v2174_v53  ;;  %1738 = vmatprep.mubr.msk.f32.mxu0 %vm1976_vm10, %v1977_v61 }
 0xbc9   :  { %1802 = vmatprep.subr.bf16.mxu0 %v1975_v54 }
 0xbcc   :  { %1804 = vmatpush3.bf16.msra.mxu0 %v2187_v60 }
 0xbcd   :  { %1811 = vmatprep.subr.bf16.mxu0 %v1975_v54 }
 0xc9a   :  { %v1088_v1 = vpop.f32.mrb[12].mxu0 }
 0xc9b   :  { %v1092_v3 = vadd.f32 %v1088_v1, %v2218_v11  ;;  %v1718_v41 = vpop.f32.mrb[13].mxu0 }
 0xc9d   :  { %1875 = vtanh.f32 %v1092_v3  ;;  %v1610_v45 = vmul.f32 -1.442695, %v1092_v3 }
 0xc9f   :  { %1877 = vpow2.f32 %v1610_v45 }
 0xca7   :  { %v1876_v44 = vpop.eup %1875 }
 0xca8   :  { %1102 = vrot.lane.b32.xlu0 %v1876_v44, %s1978_s1 }
 0xca9   :  { %v1878_v46 = vpop.eup %1877 }
 0xcaa   :  { %v1096_v47 = vadd.f32 1.0, %v1878_v46 }
 0xcac   :  { %1118 = vperm.xlu0 %1839, %v2211_v63   ;;  %1879 = vrcp.f32 %v1096_v47 }
 0xcb0   :  { %1840 = vset.pattern.permute.xlu0 %v1983_v9 }
 0xcb6   :  { %v1880_v48 = vpop.eup %1879 }
 0xcb7   :  { %v1100_v11 = vmul.f32 %v1880_v48, %v1016_v50 }
 0xd1a   :  { %v1103_v42 = vpop.permute.xlu0 %1102 }
 0xd1b   :  { %v1105_v49 = vmul.f32 %v1880_v48, %v1103_v42  ;;  %v1985_v42 = vmov 7  }
 0xd1d   :  { %1107 = vrot.lane.b32.xlu1 %v1105_v49, %s1972_s30 }
 0xd2b   :  { %v1119_v62 = vpop.permute.xlu0 %1118 }
 0xd2c   :  { %vm1120_vm1 = vcmp.eq.s32.totalorder %v1119_v62, 1  ;;  %v1440_v62 = vld [vmem:[%s2355_s3 + $0x20] sm:$0xff] }
 0xd8f   :  { %v1108_v51 = vpop.permute.xlu1 %1107 }
 0xd90   :  { %v1110_v58 = vadd.f32 %v1108_v51, %v1100_v11 }
 0xd92   :  { %1881 = vtanh.f32 %v1110_v58  ;;  %v1122_v23 = vsel %vm1120_vm1, %v1110_v58, %v1016_v50 }
 0xd9c   :  { %v1882_v59 = vpop.eup %1881 }
 0xd9d   :  { %1113 = vrot.lane.b32.xlu1 %v1882_v59, %s1978_s1 }
 0xe0f   :  { %v1114_v0 = vpop.permute.xlu1 %1113 }
 0xe10   :  { %v1116_v5 = vmul.f32 %v1880_v48, %v1114_v0  ;;  %v1441_v0 = vld [vmem:[%s2355_s3 + $0x28] sm:$0xff] }
 0xe12   :  { %v1121_v7 = vsel %vm1120_vm1, %v1116_v5, %v1015_v55  ;;  %v1812_v5 = vpack.c.bf16 %v1441_v0, %v1440_v62 }
 0xe13   :  { %1124 = vrot.lane.b32.xlu1 %v1121_v7, %s1972_s30 }
 0xe85   :  { %v1125_v8 = vpop.permute.xlu1 %1124 }
 0xe86   :  { %1728 = vmatmul.mubr.msk.f32.vlgmr.msra.gmra.mrb[12].mxu1 %vm593_vm13, %v1125_v8 }
 0xe87   :  { %1807 = vmatpush3.bf16.msra.mxu1 %v2174_v53  ;;  %1749 = vmatprep.mubr.msk.f32.mxu1 %vm1976_vm10, %v1977_v61 }
 0xe88   :  { %1808 = vmatprep.subr.bf16.mxu1 %v1975_v54 }
 0xe8b   :  { %1810 = vmatpush3.bf16.msra.mxu1 %v2187_v60 }
 0xf59   :  { %v1194_v10 = vpop.f32.mrb[12].mxu1 }
 0xf5a   :  { %v1198_v15 = vadd.f32 %v1194_v10, %v2222_v14  ;;  %v1729_v16 = vpop.f32.mrb[13].mxu1 }
 0xf5c   :  { %1883 = vtanh.f32 %v1198_v15  ;;  %v1612_v53 = vmul.f32 -1.442695, %v1198_v15 }
 0xf5e   :  { %1885 = vpow2.f32 %v1612_v53 }
 0xf66   :  { %v1884_v17 = vpop.eup %1883 }
 0xf67   :  { %1208 = vrot.lane.b32.xlu0 %v1884_v17, %s1978_s1 }
 0xf68   :  { %v1886_v4 = vpop.eup %1885 }
 0xf69   :  { %v1202_v18 = vadd.f32 1.0, %v1886_v4  ;;  %v1617_v4 = vld [vmem:[%s2355_s3 + $0x40] ss:$0 sm:$0xff] }
 0xf6b   :  { %1224 = vperm.xlu0 %1840, %v2211_v63   ;;  %1887 = vrcp.f32 %v1202_v18 }
 0xf6f   :  { %1841 = vset.pattern.permute.xlu0 %v1984_v33 }
 0xf75   :  { %v1888_v20 = vpop.eup %1887 }
 0xf76   :  { %v1206_v14 = vmul.f32 %v1888_v20, %v1122_v23 }
 0xfd9   :  { %v1209_v22 = vpop.permute.xlu0 %1208 }
 0xfda   :  { %v1211_v60 = vmul.f32 %v1888_v20, %v1209_v22 }
 0xfdc   :  { %1213 = vrot.lane.b32.xlu1 %v1211_v60, %s1972_s30 }
 0xfea   :  { %v1225_v26 = vpop.permute.xlu0 %1224 }
 0xfeb   :  { %vm1226_vm2 = vcmp.eq.s32.totalorder %v1225_v26, 1 }
0x104e   :  { %v1214_v19 = vpop.permute.xlu1 %1213 }
0x104f   :  { %v1216_v25 = vadd.f32 %v1214_v19, %v1206_v14 }
0x1051   :  { %1889 = vtanh.f32 %v1216_v25  ;;  %v1228_v39 = vsel %vm1226_vm2, %v1216_v25, %v1122_v23 }
0x105b   :  { %v1890_v21 = vpop.eup %1889 }
0x105c   :  { %1219 = vrot.lane.b32.xlu1 %v1890_v21, %s1978_s1 }
0x10ce   :  { %v1220_v27 = vpop.permute.xlu1 %1219 }
0x10cf   :  { %v1222_v29 = vmul.f32 %v1888_v20, %v1220_v27 }
0x10d1   :  { %v1227_v24 = vsel %vm1226_vm2, %v1222_v29, %v1121_v7  ;;  %v1443_v7 = vld [vmem:[%s2355_s3 + $0x38] sm:$0xff] }
0x10d2   :  { %1230 = vrot.lane.b32.xlu1 %v1227_v24, %s1972_s30 }
0x1144   :  { %v1231_v31 = vpop.permute.xlu1 %1230 }
0x1145   :  { %1739 = vmatmul.mubr.msk.f32.vlgmr.msra.gmra.mrb[14].mxu0 %vm593_vm13, %v1231_v31 }
0x1146   :  { %1760 = vmatprep.mubr.msk.f32.mxu0 %vm1976_vm10, %v1977_v61  ;;  %1813 = vmatpush3.bf16.msra.mxu0 %v1812_v5 }
0x1147   :  { %1814 = vmatprep.subr.bf16.mxu0 %v1975_v54 }
0x1218   :  { %v1300_v34 = vpop.f32.mrb[14].mxu0 }
0x1219   :  { %v1304_v35 = vadd.f32 %v1300_v34, %v2220_v13  ;;  %v1740_v2 = vpop.f32.mrb[15].mxu0 }
0x121b   :  { %1891 = vtanh.f32 %v1304_v35  ;;  %v1614_v28 = vmul.f32 -1.442695, %v1304_v35 }
0x121d   :  { %1893 = vpow2.f32 %v1614_v28 }
0x1225   :  { %v1892_v36 = vpop.eup %1891 }
0x1226   :  { %1314 = vrot.lane.b32.xlu0 %v1892_v36, %s1978_s1 }
0x1227   :  { %v1894_v37 = vpop.eup %1893 }
0x1228   :  { %v1308_v30 = vadd.f32 1.0, %v1894_v37 }
0x122a   :  { %1330 = vperm.xlu0 %1841, %v2211_v63   ;;  %1895 = vrcp.f32 %v1308_v30 }
0x122e   :  { %1842 = vset.pattern.permute.xlu0 %v1985_v42 }
0x1234   :  { %v1896_v6 = vpop.eup %1895 }
0x1235   :  { %v1312_v13 = vmul.f32 %v1896_v6, %v1228_v39 }
0x1298   :  { %v1315_v38 = vpop.permute.xlu0 %1314 }
0x1299   :  { %v1317_v61 = vmul.f32 %v1896_v6, %v1315_v38 }
0x129b   :  { %1319 = vrot.lane.b32.xlu1 %v1317_v61, %s1972_s30 }
0x12a9   :  { %v1331_v52 = vpop.permute.xlu0 %1330 }
0x12aa   :  { %vm1332_vm3 = vcmp.eq.s32.totalorder %v1331_v52, 1 }
0x130d   :  { %v1320_v32 = vpop.permute.xlu1 %1319 }
0x130e   :  { %v1322_v40 = vadd.f32 %v1320_v32, %v1312_v13 }
0x1310   :  { %1897 = vtanh.f32 %v1322_v40 }
0x131a   :  { %v1898_v43 = vpop.eup %1897 }
0x131b   :  { %1325 = vrot.lane.b32.xlu1 %v1898_v43, %s1978_s1 }
0x138d   :  { %v1326_v55 = vpop.permute.xlu1 %1325 }
0x138e   :  { %v1328_v56 = vmul.f32 %v1896_v6, %v1326_v55 }
0x1390   :  { %v1333_v57 = vsel %vm1332_vm3, %v1328_v56, %v1227_v24 }
0x1391   :  { %1336 = vrot.lane.b32.xlu1 %v1333_v57, %s1972_s30 }
0x1403   :  { %v1337_v1 = vpop.permute.xlu1 %1336 }
0x1404   :  { %1750 = vmatmul.mubr.msk.f32.vlgmr.msra.gmra.mrb[14].mxu1 %vm593_vm13, %v1337_v1 }
0x14d7   :  { %v1406_v3 = vpop.f32.mrb[14].mxu1 }
0x14d8   :  { %v1410_v41 = vadd.f32 %v1406_v3, %v2224_v12  ;;  %v1751_v44 = vpop.f32.mrb[15].mxu1  ;;  %v1334_v12 = vsel %vm1332_vm3, %v1322_v40, %v1228_v39 }
0x14da   :  { %1899 = vtanh.f32 %v1410_v41  ;;  %v1616_v46 = vmul.f32 -1.442695, %v1410_v41 }
0x14dc   :  { %1901 = vpow2.f32 %v1616_v46 }
0x14e4   :  { %v1900_v45 = vpop.eup %1899 }
0x14e5   :  { %1420 = vrot.lane.b32.xlu0 %v1900_v45, %s1978_s1 }
0x14e6   :  { %v1902_v47 = vpop.eup %1901 }
0x14e7   :  { %v1414_v48 = vadd.f32 1.0, %v1902_v47 }
0x14e9   :  { %1903 = vrcp.f32 %v1414_v48  ;;  %1436 = vperm.xlu0 %1842, %v2211_v63   ;;  %v1442_v63 = vld [vmem:[%s2355_s3 + $0x30] sm:$0xff] }
0x14ea   :  { %v1815_v8 = vpack.c.bf16 %v1443_v7, %v1442_v63 }
0x14ec   :  { %1816 = vmatpush3.bf16.msra.mxu0 %v1815_v8 }
0x14f3   :  { %v1904_v49 = vpop.eup %1903 }
0x14f4   :  { %v1418_v51 = vmul.f32 %v1904_v49, %v1334_v12 }
0x1557   :  { %v1421_v50 = vpop.permute.xlu0 %1420 }
0x1558   :  { %v1423_v11 = vmul.f32 %v1904_v49, %v1421_v50 }
0x155a   :  { %1425 = vrot.lane.b32.xlu1 %v1423_v11, %s1972_s30 }
0x1568   :  { %v1437_v10 = vpop.permute.xlu0 %1436 }
0x1569   :  { %vm1438_vm4 = vcmp.eq.s32.totalorder %v1437_v10, 1 }
0x15cc   :  { %v1426_v58 = vpop.permute.xlu1 %1425 }
0x15cd   :  { %v1428_v59 = vadd.f32 %v1426_v58, %v1418_v51 }
0x15cf   :  { %1905 = vtanh.f32 %v1428_v59 }
0x15d9   :  { %v1906_v9 = vpop.eup %1905 }
0x15da   :  { %1431 = vrot.lane.b32.xlu1 %v1906_v9, %s1978_s1 }
0x164c   :  { %v1432_v15 = vpop.permute.xlu1 %1431 }
0x164d   :  { %v1434_v16 = vmul.f32 %v1904_v49, %v1432_v15 }
0x164f   :  { %v1439_v17 = vsel %vm1438_vm4, %v1434_v16, %v1333_v57 }
0x1650   :  { %1450 = vrot.lane.b32.xlu1 %v1439_v17, %s1972_s30 }
0x16c2   :  { %v1451_v53 = vpop.permute.xlu1 %1450 }
0x16c3   :  { %1761 = vmatmul.mubr.msk.f32.vlgmr.msra.gmra.mrb[16].mxu0 %vm593_vm13, %v1451_v53 }
0x1796   :  { %v1520_v54 = vpop.f32.mrb[16].mxu0 }
0x1797   :  { %v1521_v18 = vadd.f32 %v1617_v4, %v1520_v54  ;;  %v1762_v20 = vpop.f32.mrb[17].mxu0 }
0x1799   :  { %1524 = vst [vmem:[#allocation7] sm:$0x3] %v1521_v18 }
0x179a   :  { %1952 = shalt.err (!%p1949_p3)
}
0x179b   :  { %s1953_s24 = scalar_lea.hbm %s2356_s4, 32 }
0x179c   :  { %p1954_p4 = scmp.ne.s32.totalorder %s2356_s4, %s1953_s24  ;;  %p1957_p5 = scmp.lt.u32.totalorder %s1953_s24, %s2356_s4 }
0x179e   :  { %p1959_p6 = pnand %p1957_p5, %p1954_p4 }
0x17a0   :  { %1962 = shalt.err (!%p1959_p6)
}
0x17a1   :  { %1534 = dma.vmem_to_hbm [thread:$0]  %s1532_s21, 32, %s2356_s4, [#allocation4]  }
0x17a2   :  { %1967 = dma.done.wait [#allocation4], 32  }
0x17a3   :  { %1968 = vsyncadd [#allocation4], 4294967264 }
0x17a4   :  { %1538 = vsyncpa [#allocation3], 1 }
0x17a5   :  { %1539 = vsyncpa [#allocation4], 1 }
0x17a6   :  { %1540 = vsyncpa [#allocation5], 1 }

</bundles_post_ra>
